<compile_context>
chip_gen: v6e
topology: v6e:2x2x1
jax: 0.10.0
libtpu: 0.0.40
codegen_flags: <defaults>
</compile_context>

<pallas_src>
import functools
import math

import jax
import jax.numpy as jnp
from jax.experimental import pallas as pl
from jax.experimental.pallas import tpu as pltpu


_MXU_DTYPE = jnp.bfloat16  # bf16-in / f32-accumulate for every jnp.dot


# ----------------------------------------------------------------------------
# Pallas helpers
# ----------------------------------------------------------------------------
def _full_spec(shape):
    n = len(shape)
    return pl.BlockSpec(shape, lambda i, _n=n: (0,) * _n)


# ----------------------------------------------------------------------------
# Fused AGCN forward kernel
# ----------------------------------------------------------------------------
def _agcn_kernel(*refs, v):
    (x_ref, adj_ref,
     e1w, e1b, e2w, e2b, e3w, e3b, zlw, zlb,
     d1w, d1b, d2w, d2b, d3w, d3b, xbw, xbb,
     g1w, g2w, g3w, g4w,
     g5w_1, g5w_2, g5w_3, g5w_4, g5w_5,
     m1w_h, m1w_z, m1b,
     m2w_h, m2w_z, m2b,
     m3w_h, m3w_z, m3b,
     mlw_1, mlw_2, mlw_3, mlw_4, mlw_5, mlb,
     mu_t_ref,
     xbar_out, q_out, pred_out, z_out) = refs

    def mm(a, b):  # bf16-in / f32-acc MXU matmul
        return jnp.dot(a.astype(_MXU_DTYPE), b.astype(_MXU_DTYPE),
                       preferred_element_type=jnp.float32)

    def relu(t):
        return jnp.maximum(t, 0.0)

    def leaky_relu(t):  # F.leaky_relu default negative_slope = 0.01
        return jnp.maximum(t, 0.01 * t)

    def softmax(t):  # F.softmax(t, dim=1)
        m = jnp.max(t, axis=1, keepdims=True)
        e = jnp.exp(t - m)
        return e * pl.reciprocal(jnp.sum(e, axis=1, keepdims=True), approx=True)

    def l2_normalize(t):  # F.normalize(t, p=2, dim=1), eps = 1e-12
        nrm = jnp.sqrt(jnp.sum(t * t, axis=1, keepdims=True))
        return t * pl.reciprocal(jnp.maximum(nrm, 1e-12), approx=True)

    x = x_ref[...]
    adj = adj_ref[...].astype(_MXU_DTYPE)   # hoisted cast: reused by 5 GNN layers

    def dense(t, w_ref, b_ref, active):
        y = mm(t, w_ref[...]) + b_ref[...]
        return relu(y) if active else y

    def spmm(support):  # adj @ support (dense stand-in for torch.spmm)
        return jnp.dot(adj, support.astype(_MXU_DTYPE),
                       preferred_element_type=jnp.float32)

    def gnn(feat, w_ref, active=True):  # GNNLayer: relu(adj @ (feat @ W))
        out = spmm(mm(feat, w_ref[...]))
        return relu(out) if active else out

    # ------------------------------ SDCN_AE ------------------------------
    h1 = dense(x, e1w, e1b, True)
    h2 = dense(h1, e2w, e2b, True)
    h3 = dense(h2, e3w, e3b, True)
    z = dense(h3, zlw, zlb, False)
    dh1 = dense(z, d1w, d1b, True)
    dh2 = dense(dh1, d2w, d2b, True)
    dh3 = dense(dh2, d3w, d3b, True)
    x_bar = dense(dh3, xbw, xbb, False)

    # ------------------------------ AGCN_GNN ------------------------------
    z1 = gnn(x, g1w)
    # MLP_k(cat(h, z_k)) == leaky_relu(h @ W[:d] + z_k @ W[d:] + b), weights
    # are split host-side so no in-kernel concatenation is needed.
    m1 = l2_normalize(softmax(leaky_relu(
        mm(h1, m1w_h[...]) + mm(z1, m1w_z[...]) + m1b[...])))
    z2 = gnn(m1[:, 0:1] * z1 + m1[:, 1:2] * h1, g2w)

    m2 = l2_normalize(softmax(leaky_relu(
        mm(h2, m2w_h[...]) + mm(z2, m2w_z[...]) + m2b[...])))
    z3 = gnn(m2[:, 0:1] * z2 + m2[:, 1:2] * h2, g3w)

    m3 = l2_normalize(softmax(leaky_relu(
        mm(h3, m3w_h[...]) + mm(z3, m3w_z[...]) + m3b[...])))
    z4 = gnn(m3[:, 0:1] * z3 + m3[:, 1:2] * h3, g4w)

    # MLP_L(cat(z1, z2, z3, z4, z)) with the (n_all, 5) weight split host-side.
    u = l2_normalize(softmax(leaky_relu(
        mm(z1, mlw_1[...]) + mm(z2, mlw_2[...]) + mm(z3, mlw_3[...])
        + mm(z4, mlw_4[...]) + mm(z, mlw_5[...]) + mlb[...])))

    # cat(u0*z1, ..., u4*z) @ W5 == u0*(z1@W5_1) + ...  (per-row scalars commute
    # with the matmul), with gnn_5's (n_all, K) weight split host-side.
    support5 = (u[:, 0:1] * mm(z1, g5w_1[...])
                + u[:, 1:2] * mm(z2, g5w_2[...])
                + u[:, 2:3] * mm(z3, g5w_3[...])
                + u[:, 3:4] * mm(z4, g5w_4[...])
                + u[:, 4:5] * mm(z, g5w_5[...]))
    predict = softmax(spmm(support5))            # gnn_5 with active=False

    # --------------------------- Student's-t q ---------------------------
    # ||z_i - mu_j||^2 = ||z_i||^2 + ||mu_j||^2 - 2 z_i . mu_j  (MXU form)
    mu_t = mu_t_ref[...]                                      # (n_z, K)
    z_sq = jnp.sum(z * z, axis=1, keepdims=True)              # (N, 1)
    mu_sq = jnp.sum(mu_t * mu_t, axis=0, keepdims=True)       # (1, K)
    d2 = jnp.maximum(z_sq + mu_sq - 2.0 * mm(z, mu_t), 0.0)   # (N, K)
    q = pl.reciprocal(1.0 + d2 * (1.0 / v), approx=True)
    exponent = (v + 1.0) / 2.0
    if exponent != 1.0:                                       # skipped when v == 1
        q = jnp.power(q, exponent)
    q = q * pl.reciprocal(jnp.sum(q, axis=1, keepdims=True), approx=True)

    xbar_out[...] = x_bar
    q_out[...] = q
    pred_out[...] = predict
    z_out[...] = z


# ----------------------------------------------------------------------------
# Host wrapper
# ----------------------------------------------------------------------------
def agcn_forward(x, adj, params, v=1.0):
    p = params
    N, n_input = x.shape
    e1 = p["enc1_w"].shape[1]
    e2 = p["enc2_w"].shape[1]
    e3 = p["enc3_w"].shape[1]
    n_z = p["z_w"].shape[1]
    n_clusters = p["cluster_layer"].shape[0]

    # Host-side weight splits so the kernel replaces every torch.cat(...)@W
    # with a sum of sub-matmuls (mathematically identical).
    m1w_h, m1w_z = p["mlp1_w"][:e1], p["mlp1_w"][e1:]
    m2w_h, m2w_z = p["mlp2_w"][:e2], p["mlp2_w"][e2:]
    m3w_h, m3w_z = p["mlp3_w"][:e3], p["mlp3_w"][e3:]
    s0, s1, s2, s3 = e1, e1 + e2, e1 + e2 + e3, e1 + e2 + e3 + n_z
    mlw = p["mlpl_w"]
    mlw_1, mlw_2, mlw_3, mlw_4, mlw_5 = mlw[:s0], mlw[s0:s1], mlw[s1:s2], mlw[s2:s3], mlw[s3:]
    g5w = p["gnn5_w"]
    g5w_1, g5w_2, g5w_3, g5w_4, g5w_5 = g5w[:s0], g5w[s0:s1], g5w[s1:s2], g5w[s2:s3], g5w[s3:]
    mu_t = p["cluster_layer"].T      # (n_z, K): plain MXU matmul for z @ mu^T

    inputs = (
        x, adj,
        p["enc1_w"], p["enc1_b"], p["enc2_w"], p["enc2_b"],
        p["enc3_w"], p["enc3_b"], p["z_w"], p["z_b"],
        p["dec1_w"], p["dec1_b"], p["dec2_w"], p["dec2_b"],
        p["dec3_w"], p["dec3_b"], p["xbar_w"], p["xbar_b"],
        p["gnn1_w"], p["gnn2_w"], p["gnn3_w"], p["gnn4_w"],
        g5w_1, g5w_2, g5w_3, g5w_4, g5w_5,
        m1w_h, m1w_z, p["mlp1_b"],
        m2w_h, m2w_z, p["mlp2_b"],
        m3w_h, m3w_z, p["mlp3_b"],
        mlw_1, mlw_2, mlw_3, mlw_4, mlw_5, p["mlpl_b"],
        mu_t,
    )

    out_shapes = (
        jax.ShapeDtypeStruct((N, n_input), jnp.float32),   # x_bar
        jax.ShapeDtypeStruct((N, n_clusters), jnp.float32),  # q
        jax.ShapeDtypeStruct((N, n_clusters), jnp.float32),  # predict
        jax.ShapeDtypeStruct((N, n_z), jnp.float32),       # z
    )

    return pl.pallas_call(
        functools.partial(_agcn_kernel, v=float(v)),
        out_shape=out_shapes,
        grid=(1,),
        in_specs=[_full_spec(a.shape) for a in inputs],
        out_specs=tuple(_full_spec(s.shape) for s in out_shapes),
        compiler_params=pltpu.CompilerParams(
            dimension_semantics=("arbitrary",),
            vmem_limit_bytes=32 * 1024 * 1024,
        ),
    )(*inputs)


# ----------------------------------------------------------------------------
# Deterministic parameter construction
# ----------------------------------------------------------------------------
def _torch_linear_init(key, n_in, n_out):
    """PyTorch nn.Linear default init; weight stored transposed as (in, out)."""
    kw, kb = jax.random.split(key)
    bound = 1.0 / math.sqrt(n_in)
    w = jax.random.uniform(kw, (n_in, n_out), jnp.float32, -bound, bound)
    b = jax.random.uniform(kb, (1, n_out), jnp.float32, -bound, bound)
    return w, b


def _xavier_uniform(key, n_in, n_out):
    a = math.sqrt(6.0 / (n_in + n_out))
    return jax.random.uniform(key, (n_in, n_out), jnp.float32, -a, a)


def _xavier_normal(key, n_rows, n_cols):
    std = math.sqrt(2.0 / (n_rows + n_cols))
    return std * jax.random.normal(key, (n_rows, n_cols), jnp.float32)


def make_params(key, n_enc_1, n_enc_2, n_enc_3, n_dec_1, n_dec_2, n_dec_3,
                n_input, n_z, n_clusters):
    # TODO(synk): the original AGCN loads pretrained SDCN_AE weights via
    # torch.load(load_from); here the AE is initialized deterministically.
    n_all = n_enc_1 + n_enc_2 + n_enc_3 + n_z + n_z
    keys = jax.random.split(key, 18)
    p = {}
    p["enc1_w"], p["enc1_b"] = _torch_linear_init(keys[0], n_input, n_enc_1)
    p["enc2_w"], p["enc2_b"] = _torch_linear_init(keys[1], n_enc_1, n_enc_2)
    p["enc3_w"], p["enc3_b"] = _torch_linear_init(keys[2], n_enc_2, n_enc_3)
    p["z_w"], p["z_b"] = _torch_linear_init(keys[3], n_enc_3, n_z)
    p["dec1_w"], p["dec1_b"] = _torch_linear_init(keys[4], n_z, n_dec_1)
    p["dec2_w"], p["dec2_b"] = _torch_linear_init(keys[5], n_dec_1, n_dec_2)
    p["dec3_w"], p["dec3_b"] = _torch_linear_init(keys[6], n_dec_2, n_dec_3)
    p["xbar_w"], p["xbar_b"] = _torch_linear_init(keys[7], n_dec_3, n_input)
    p["gnn1_w"] = _xavier_uniform(keys[8], n_input, n_enc_1)
    p["gnn2_w"] = _xavier_uniform(keys[9], n_enc_1, n_enc_2)
    p["gnn3_w"] = _xavier_uniform(keys[10], n_enc_2, n_enc_3)
    p["gnn4_w"] = _xavier_uniform(keys[11], n_enc_3, n_z)
    p["gnn5_w"] = _xavier_uniform(keys[12], n_all, n_clusters)
    p["mlp1_w"], p["mlp1_b"] = _torch_linear_init(keys[13], 2 * n_enc_1, 2)
    p["mlp2_w"], p["mlp2_b"] = _torch_linear_init(keys[14], 2 * n_enc_2, 2)
    p["mlp3_w"], p["mlp3_b"] = _torch_linear_init(keys[15], 2 * n_enc_3, 2)
    p["mlpl_w"], p["mlpl_b"] = _torch_linear_init(keys[16], n_all, 5)
    p["cluster_layer"] = _xavier_normal(keys[17], n_clusters, n_z)
    return p


# ----------------------------------------------------------------------------
if __name__ == "__main__":
    key = jax.random.PRNGKey(0)

    # Small shapes consistent with the module (the original's hard-coded
    # repeat(1, 500/2000/10) widths are generalized via broadcasting).
    N = 8
    n_input = 16
    n_enc_1, n_enc_2, n_enc_3 = 32, 32, 16
    n_dec_1, n_dec_2, n_dec_3 = 16, 32, 32
    n_z = 8
    n_clusters = 4
    v = 1.0

    k_x, k_adj, k_p = jax.random.split(key, 3)
    x = jax.random.normal(k_x, (N, n_input), jnp.float32)

    # Dense symmetric adjacency with self loops, row-normalized (stands in for
    # the sparse normalized adjacency fed to torch.spmm).
    a = (jax.random.uniform(k_adj, (N, N)) > 0.6).astype(jnp.float32)
    a = jnp.maximum(a, a.T) + jnp.eye(N, dtype=jnp.float32)
    adj = a / jnp.sum(a, axis=1, keepdims=True)

    params = make_params(k_p, n_enc_1, n_enc_2, n_enc_3,
                         n_dec_1, n_dec_2, n_dec_3, n_input, n_z, n_clusters)

    agcn = jax.jit(functools.partial(agcn_forward, v=v))
    x_bar, q, predict, z = agcn(x, adj, params)
    jax.block_until_ready((x_bar, q, predict, z))

    assert x_bar.shape == (N, n_input)
    assert q.shape == (N, n_clusters)
    assert predict.shape == (N, n_clusters)
    assert z.shape == (N, n_z)
    assert bool(jnp.all(jnp.isfinite(x_bar)))
    assert bool(jnp.all(jnp.isfinite(z)))
    # Soft assignments / predictions are row-normalized probabilities.
    assert float(jnp.max(jnp.abs(jnp.sum(q, axis=1) - 1.0))) < 5e-2
    assert float(jnp.max(jnp.abs(jnp.sum(predict, axis=1) - 1.0))) < 5e-2
    assert bool(jnp.all(q >= 0.0)) and bool(jnp.all(predict >= 0.0))

    print("KERNEL_OK")
</pallas_src>

<mosaic_0001>
module attributes {stable_mosaic.version = 11 : i64} {
  func.func @_agcn_kernel(%arg0: i32, %arg1: memref<8x16xf32, #tpu.memory_space<vmem>>, %arg2: memref<8x8xf32, #tpu.memory_space<vmem>>, %arg3: memref<16x32xf32, #tpu.memory_space<vmem>>, %arg4: memref<1x32xf32, #tpu.memory_space<vmem>>, %arg5: memref<32x32xf32, #tpu.memory_space<vmem>>, %arg6: memref<1x32xf32, #tpu.memory_space<vmem>>, %arg7: memref<32x16xf32, #tpu.memory_space<vmem>>, %arg8: memref<1x16xf32, #tpu.memory_space<vmem>>, %arg9: memref<16x8xf32, #tpu.memory_space<vmem>>, %arg10: memref<1x8xf32, #tpu.memory_space<vmem>>, %arg11: memref<8x16xf32, #tpu.memory_space<vmem>>, %arg12: memref<1x16xf32, #tpu.memory_space<vmem>>, %arg13: memref<16x32xf32, #tpu.memory_space<vmem>>, %arg14: memref<1x32xf32, #tpu.memory_space<vmem>>, %arg15: memref<32x32xf32, #tpu.memory_space<vmem>>, %arg16: memref<1x32xf32, #tpu.memory_space<vmem>>, %arg17: memref<32x16xf32, #tpu.memory_space<vmem>>, %arg18: memref<1x16xf32, #tpu.memory_space<vmem>>, %arg19: memref<16x32xf32, #tpu.memory_space<vmem>>, %arg20: memref<32x32xf32, #tpu.memory_space<vmem>>, %arg21: memref<32x16xf32, #tpu.memory_space<vmem>>, %arg22: memref<16x8xf32, #tpu.memory_space<vmem>>, %arg23: memref<32x4xf32, #tpu.memory_space<vmem>>, %arg24: memref<32x4xf32, #tpu.memory_space<vmem>>, %arg25: memref<16x4xf32, #tpu.memory_space<vmem>>, %arg26: memref<8x4xf32, #tpu.memory_space<vmem>>, %arg27: memref<8x4xf32, #tpu.memory_space<vmem>>, %arg28: memref<32x2xf32, #tpu.memory_space<vmem>>, %arg29: memref<32x2xf32, #tpu.memory_space<vmem>>, %arg30: memref<1x2xf32, #tpu.memory_space<vmem>>, %arg31: memref<32x2xf32, #tpu.memory_space<vmem>>, %arg32: memref<32x2xf32, #tpu.memory_space<vmem>>, %arg33: memref<1x2xf32, #tpu.memory_space<vmem>>, %arg34: memref<16x2xf32, #tpu.memory_space<vmem>>, %arg35: memref<16x2xf32, #tpu.memory_space<vmem>>, %arg36: memref<1x2xf32, #tpu.memory_space<vmem>>, %arg37: memref<32x5xf32, #tpu.memory_space<vmem>>, %arg38: memref<32x5xf32, #tpu.memory_space<vmem>>, %arg39: memref<16x5xf32, #tpu.memory_space<vmem>>, %arg40: memref<8x5xf32, #tpu.memory_space<vmem>>, %arg41: memref<8x5xf32, #tpu.memory_space<vmem>>, %arg42: memref<1x5xf32, #tpu.memory_space<vmem>>, %arg43: memref<8x4xf32, #tpu.memory_space<vmem>>, %arg44: memref<8x16xf32, #tpu.memory_space<vmem>>, %arg45: memref<8x4xf32, #tpu.memory_space<vmem>>, %arg46: memref<8x4xf32, #tpu.memory_space<vmem>>, %arg47: memref<8x8xf32, #tpu.memory_space<vmem>>) attributes {dimension_semantics = [#tpu.dimension_semantics<arbitrary>], iteration_bounds = array<i64: 1>, scalar_prefetch = 0 : i64, scratch_operands = 0 : i64, tpu.core_type = #tpu.core_type<tc>, window_params = [{pipeline_mode = #tpu.pipeline_mode<synchronous>, transform_indices = @transform_0, window_bounds = array<i64: 8, 16>}, {pipeline_mode = #tpu.pipeline_mode<synchronous>, transform_indices = @transform_1, window_bounds = array<i64: 8, 8>}, {pipeline_mode = #tpu.pipeline_mode<synchronous>, transform_indices = @transform_2, window_bounds = array<i64: 16, 32>}, {pipeline_mode = #tpu.pipeline_mode<synchronous>, transform_indices = @transform_3, window_bounds = array<i64: 1, 32>}, {pipeline_mode = #tpu.pipeline_mode<synchronous>, transform_indices = @transform_4, window_bounds = array<i64: 32, 32>}, {pipeline_mode = #tpu.pipeline_mode<synchronous>, transform_indices = @transform_5, window_bounds = array<i64: 1, 32>}, {pipeline_mode = #tpu.pipeline_mode<synchronous>, transform_indices = @transform_6, window_bounds = array<i64: 32, 16>}, {pipeline_mode = #tpu.pipeline_mode<synchronous>, transform_indices = @transform_7, window_bounds = array<i64: 1, 16>}, {pipeline_mode = #tpu.pipeline_mode<synchronous>, transform_indices = @transform_8, window_bounds = array<i64: 16, 8>}, {pipeline_mode = #tpu.pipeline_mode<synchronous>, transform_indices = @transform_9, window_bounds = array<i64: 1, 8>}, {pipeline_mode = #tpu.pipeline_mode<synchronous>, transform_indices = @transform_10, window_bounds = array<i64: 8, 16>}, {pipeline_mode = #tpu.pipeline_mode<synchronous>, transform_indices = @transform_11, window_bounds = array<i64: 1, 16>}, {pipeline_mode = #tpu.pipeline_mode<synchronous>, transform_indices = @transform_12, window_bounds = array<i64: 16, 32>}, {pipeline_mode = #tpu.pipeline_mode<synchronous>, transform_indices = @transform_13, window_bounds = array<i64: 1, 32>}, {pipeline_mode = #tpu.pipeline_mode<synchronous>, transform_indices = @transform_14, window_bounds = array<i64: 32, 32>}, {pipeline_mode = #tpu.pipeline_mode<synchronous>, transform_indices = @transform_15, window_bounds = array<i64: 1, 32>}, {pipeline_mode = #tpu.pipeline_mode<synchronous>, transform_indices = @transform_16, window_bounds = array<i64: 32, 16>}, {pipeline_mode = #tpu.pipeline_mode<synchronous>, transform_indices = @transform_17, window_bounds = array<i64: 1, 16>}, {pipeline_mode = #tpu.pipeline_mode<synchronous>, transform_indices = @transform_18, window_bounds = array<i64: 16, 32>}, {pipeline_mode = #tpu.pipeline_mode<synchronous>, transform_indices = @transform_19, window_bounds = array<i64: 32, 32>}, {pipeline_mode = #tpu.pipeline_mode<synchronous>, transform_indices = @transform_20, window_bounds = array<i64: 32, 16>}, {pipeline_mode = #tpu.pipeline_mode<synchronous>, transform_indices = @transform_21, window_bounds = array<i64: 16, 8>}, {pipeline_mode = #tpu.pipeline_mode<synchronous>, transform_indices = @transform_22, window_bounds = array<i64: 32, 4>}, {pipeline_mode = #tpu.pipeline_mode<synchronous>, transform_indices = @transform_23, window_bounds = array<i64: 32, 4>}, {pipeline_mode = #tpu.pipeline_mode<synchronous>, transform_indices = @transform_24, window_bounds = array<i64: 16, 4>}, {pipeline_mode = #tpu.pipeline_mode<synchronous>, transform_indices = @transform_25, window_bounds = array<i64: 8, 4>}, {pipeline_mode = #tpu.pipeline_mode<synchronous>, transform_indices = @transform_26, window_bounds = array<i64: 8, 4>}, {pipeline_mode = #tpu.pipeline_mode<synchronous>, transform_indices = @transform_27, window_bounds = array<i64: 32, 2>}, {pipeline_mode = #tpu.pipeline_mode<synchronous>, transform_indices = @transform_28, window_bounds = array<i64: 32, 2>}, {pipeline_mode = #tpu.pipeline_mode<synchronous>, transform_indices = @transform_29, window_bounds = array<i64: 1, 2>}, {pipeline_mode = #tpu.pipeline_mode<synchronous>, transform_indices = @transform_30, window_bounds = array<i64: 32, 2>}, {pipeline_mode = #tpu.pipeline_mode<synchronous>, transform_indices = @transform_31, window_bounds = array<i64: 32, 2>}, {pipeline_mode = #tpu.pipeline_mode<synchronous>, transform_indices = @transform_32, window_bounds = array<i64: 1, 2>}, {pipeline_mode = #tpu.pipeline_mode<synchronous>, transform_indices = @transform_33, window_bounds = array<i64: 16, 2>}, {pipeline_mode = #tpu.pipeline_mode<synchronous>, transform_indices = @transform_34, window_bounds = array<i64: 16, 2>}, {pipeline_mode = #tpu.pipeline_mode<synchronous>, transform_indices = @transform_35, window_bounds = array<i64: 1, 2>}, {pipeline_mode = #tpu.pipeline_mode<synchronous>, transform_indices = @transform_36, window_bounds = array<i64: 32, 5>}, {pipeline_mode = #tpu.pipeline_mode<synchronous>, transform_indices = @transform_37, window_bounds = array<i64: 32, 5>}, {pipeline_mode = #tpu.pipeline_mode<synchronous>, transform_indices = @transform_38, window_bounds = array<i64: 16, 5>}, {pipeline_mode = #tpu.pipeline_mode<synchronous>, transform_indices = @transform_39, window_bounds = array<i64: 8, 5>}, {pipeline_mode = #tpu.pipeline_mode<synchronous>, transform_indices = @transform_40, window_bounds = array<i64: 8, 5>}, {pipeline_mode = #tpu.pipeline_mode<synchronous>, transform_indices = @transform_41, window_bounds = array<i64: 1, 5>}, {pipeline_mode = #tpu.pipeline_mode<synchronous>, transform_indices = @transform_42, window_bounds = array<i64: 8, 4>}, {pipeline_mode = #tpu.pipeline_mode<synchronous>, transform_indices = @transform_43, window_bounds = array<i64: 8, 16>}, {pipeline_mode = #tpu.pipeline_mode<synchronous>, transform_indices = @transform_44, window_bounds = array<i64: 8, 4>}, {pipeline_mode = #tpu.pipeline_mode<synchronous>, transform_indices = @transform_45, window_bounds = array<i64: 8, 4>}, {pipeline_mode = #tpu.pipeline_mode<synchronous>, transform_indices = @transform_46, window_bounds = array<i64: 8, 8>}]} {
    %c0 = arith.constant 0 : index
    %c0_0 = arith.constant 0 : index
    %0 = vector.load %arg1[%c0, %c0_0] : memref<8x16xf32, #tpu.memory_space<vmem>>, vector<8x16xf32>
    %c0_1 = arith.constant 0 : index
    %c0_2 = arith.constant 0 : index
    %1 = vector.load %arg2[%c0_1, %c0_2] : memref<8x8xf32, #tpu.memory_space<vmem>>, vector<8x8xf32>
    %2 = arith.truncf %1 : vector<8x8xf32> to vector<8x8xbf16>
    %c0_3 = arith.constant 0 : index
    %c0_4 = arith.constant 0 : index
    %3 = vector.load %arg3[%c0_3, %c0_4] : memref<16x32xf32, #tpu.memory_space<vmem>>, vector<16x32xf32>
    %4 = arith.truncf %0 : vector<8x16xf32> to vector<8x16xbf16>
    %5 = arith.truncf %3 : vector<16x32xf32> to vector<16x32xbf16>
    %cst = arith.constant dense<0.000000e+00> : vector<8x32xf32>
    %6 = tpu.matmul %4, %5, %cst {dimension_numbers = #tpu.dot_dimension_numbers<[1], [0], [0], [1], [0, 0, 1, 1], [], []>} : vector<8x16xbf16>, vector<16x32xbf16>, vector<8x32xf32> -> vector<8x32xf32>
    %c0_5 = arith.constant 0 : index
    %c0_6 = arith.constant 0 : index
    %7 = vector.load %arg4[%c0_5, %c0_6] : memref<1x32xf32, #tpu.memory_space<vmem>>, vector<1x32xf32>
    %8 = vector.broadcast %7 : vector<1x32xf32> to vector<8x32xf32>
    %9 = arith.addf %6, %8 : vector<8x32xf32>
    %cst_7 = arith.constant 0.000000e+00 : f32
    %10 = vector.broadcast %cst_7 : f32 to vector<8x32xf32>
    %11 = arith.maximumf %9, %10 : vector<8x32xf32>
    %c0_8 = arith.constant 0 : index
    %c0_9 = arith.constant 0 : index
    %12 = vector.load %arg5[%c0_8, %c0_9] : memref<32x32xf32, #tpu.memory_space<vmem>>, vector<32x32xf32>
    %13 = arith.truncf %11 : vector<8x32xf32> to vector<8x32xbf16>
    %14 = arith.truncf %12 : vector<32x32xf32> to vector<32x32xbf16>
    %cst_10 = arith.constant dense<0.000000e+00> : vector<8x32xf32>
    %15 = tpu.matmul %13, %14, %cst_10 {dimension_numbers = #tpu.dot_dimension_numbers<[1], [0], [0], [1], [0, 0, 1, 1], [], []>} : vector<8x32xbf16>, vector<32x32xbf16>, vector<8x32xf32> -> vector<8x32xf32>
    %c0_11 = arith.constant 0 : index
    %c0_12 = arith.constant 0 : index
    %16 = vector.load %arg6[%c0_11, %c0_12] : memref<1x32xf32, #tpu.memory_space<vmem>>, vector<1x32xf32>
    %17 = vector.broadcast %16 : vector<1x32xf32> to vector<8x32xf32>
    %18 = arith.addf %15, %17 : vector<8x32xf32>
    %cst_13 = arith.constant 0.000000e+00 : f32
    %19 = vector.broadcast %cst_13 : f32 to vector<8x32xf32>
    %20 = arith.maximumf %18, %19 : vector<8x32xf32>
    %c0_14 = arith.constant 0 : index
    %c0_15 = arith.constant 0 : index
    %21 = vector.load %arg7[%c0_14, %c0_15] : memref<32x16xf32, #tpu.memory_space<vmem>>, vector<32x16xf32>
    %22 = arith.truncf %20 : vector<8x32xf32> to vector<8x32xbf16>
    %23 = arith.truncf %21 : vector<32x16xf32> to vector<32x16xbf16>
    %cst_16 = arith.constant dense<0.000000e+00> : vector<8x16xf32>
    %24 = tpu.matmul %22, %23, %cst_16 {dimension_numbers = #tpu.dot_dimension_numbers<[1], [0], [0], [1], [0, 0, 1, 1], [], []>} : vector<8x32xbf16>, vector<32x16xbf16>, vector<8x16xf32> -> vector<8x16xf32>
    %c0_17 = arith.constant 0 : index
    %c0_18 = arith.constant 0 : index
    %25 = vector.load %arg8[%c0_17, %c0_18] : memref<1x16xf32, #tpu.memory_space<vmem>>, vector<1x16xf32>
    %26 = vector.broadcast %25 : vector<1x16xf32> to vector<8x16xf32>
    %27 = arith.addf %24, %26 : vector<8x16xf32>
    %cst_19 = arith.constant 0.000000e+00 : f32
    %28 = vector.broadcast %cst_19 : f32 to vector<8x16xf32>
    %29 = arith.maximumf %27, %28 : vector<8x16xf32>
    %c0_20 = arith.constant 0 : index
    %c0_21 = arith.constant 0 : index
    %30 = vector.load %arg9[%c0_20, %c0_21] : memref<16x8xf32, #tpu.memory_space<vmem>>, vector<16x8xf32>
    %31 = arith.truncf %29 : vector<8x16xf32> to vector<8x16xbf16>
    %32 = arith.truncf %30 : vector<16x8xf32> to vector<16x8xbf16>
    %cst_22 = arith.constant dense<0.000000e+00> : vector<8x8xf32>
    %33 = tpu.matmul %31, %32, %cst_22 {dimension_numbers = #tpu.dot_dimension_numbers<[1], [0], [0], [1], [0, 0, 1, 1], [], []>} : vector<8x16xbf16>, vector<16x8xbf16>, vector<8x8xf32> -> vector<8x8xf32>
    %c0_23 = arith.constant 0 : index
    %c0_24 = arith.constant 0 : index
    %34 = vector.load %arg10[%c0_23, %c0_24] : memref<1x8xf32, #tpu.memory_space<vmem>>, vector<1x8xf32>
    %35 = vector.broadcast %34 : vector<1x8xf32> to vector<8x8xf32>
    %36 = arith.addf %33, %35 : vector<8x8xf32>
    %c0_25 = arith.constant 0 : index
    %c0_26 = arith.constant 0 : index
    %37 = vector.load %arg11[%c0_25, %c0_26] : memref<8x16xf32, #tpu.memory_space<vmem>>, vector<8x16xf32>
    %38 = arith.truncf %36 : vector<8x8xf32> to vector<8x8xbf16>
    %39 = arith.truncf %37 : vector<8x16xf32> to vector<8x16xbf16>
    %cst_27 = arith.constant dense<0.000000e+00> : vector<8x16xf32>
    %40 = tpu.matmul %38, %39, %cst_27 {dimension_numbers = #tpu.dot_dimension_numbers<[1], [0], [0], [1], [0, 0, 1, 1], [], []>} : vector<8x8xbf16>, vector<8x16xbf16>, vector<8x16xf32> -> vector<8x16xf32>
    %c0_28 = arith.constant 0 : index
    %c0_29 = arith.constant 0 : index
    %41 = vector.load %arg12[%c0_28, %c0_29] : memref<1x16xf32, #tpu.memory_space<vmem>>, vector<1x16xf32>
    %42 = vector.broadcast %41 : vector<1x16xf32> to vector<8x16xf32>
    %43 = arith.addf %40, %42 : vector<8x16xf32>
    %cst_30 = arith.constant 0.000000e+00 : f32
    %44 = vector.broadcast %cst_30 : f32 to vector<8x16xf32>
    %45 = arith.maximumf %43, %44 : vector<8x16xf32>
    %c0_31 = arith.constant 0 : index
    %c0_32 = arith.constant 0 : index
    %46 = vector.load %arg13[%c0_31, %c0_32] : memref<16x32xf32, #tpu.memory_space<vmem>>, vector<16x32xf32>
    %47 = arith.truncf %45 : vector<8x16xf32> to vector<8x16xbf16>
    %48 = arith.truncf %46 : vector<16x32xf32> to vector<16x32xbf16>
    %cst_33 = arith.constant dense<0.000000e+00> : vector<8x32xf32>
    %49 = tpu.matmul %47, %48, %cst_33 {dimension_numbers = #tpu.dot_dimension_numbers<[1], [0], [0], [1], [0, 0, 1, 1], [], []>} : vector<8x16xbf16>, vector<16x32xbf16>, vector<8x32xf32> -> vector<8x32xf32>
    %c0_34 = arith.constant 0 : index
    %c0_35 = arith.constant 0 : index
    %50 = vector.load %arg14[%c0_34, %c0_35] : memref<1x32xf32, #tpu.memory_space<vmem>>, vector<1x32xf32>
    %51 = vector.broadcast %50 : vector<1x32xf32> to vector<8x32xf32>
    %52 = arith.addf %49, %51 : vector<8x32xf32>
    %cst_36 = arith.constant 0.000000e+00 : f32
    %53 = vector.broadcast %cst_36 : f32 to vector<8x32xf32>
    %54 = arith.maximumf %52, %53 : vector<8x32xf32>
    %c0_37 = arith.constant 0 : index
    %c0_38 = arith.constant 0 : index
    %55 = vector.load %arg15[%c0_37, %c0_38] : memref<32x32xf32, #tpu.memory_space<vmem>>, vector<32x32xf32>
    %56 = arith.truncf %54 : vector<8x32xf32> to vector<8x32xbf16>
    %57 = arith.truncf %55 : vector<32x32xf32> to vector<32x32xbf16>
    %cst_39 = arith.constant dense<0.000000e+00> : vector<8x32xf32>
    %58 = tpu.matmul %56, %57, %cst_39 {dimension_numbers = #tpu.dot_dimension_numbers<[1], [0], [0], [1], [0, 0, 1, 1], [], []>} : vector<8x32xbf16>, vector<32x32xbf16>, vector<8x32xf32> -> vector<8x32xf32>
    %c0_40 = arith.constant 0 : index
    %c0_41 = arith.constant 0 : index
    %59 = vector.load %arg16[%c0_40, %c0_41] : memref<1x32xf32, #tpu.memory_space<vmem>>, vector<1x32xf32>
    %60 = vector.broadcast %59 : vector<1x32xf32> to vector<8x32xf32>
    %61 = arith.addf %58, %60 : vector<8x32xf32>
    %cst_42 = arith.constant 0.000000e+00 : f32
    %62 = vector.broadcast %cst_42 : f32 to vector<8x32xf32>
    %63 = arith.maximumf %61, %62 : vector<8x32xf32>
    %c0_43 = arith.constant 0 : index
    %c0_44 = arith.constant 0 : index
    %64 = vector.load %arg17[%c0_43, %c0_44] : memref<32x16xf32, #tpu.memory_space<vmem>>, vector<32x16xf32>
    %65 = arith.truncf %63 : vector<8x32xf32> to vector<8x32xbf16>
    %66 = arith.truncf %64 : vector<32x16xf32> to vector<32x16xbf16>
    %cst_45 = arith.constant dense<0.000000e+00> : vector<8x16xf32>
    %67 = tpu.matmul %65, %66, %cst_45 {dimension_numbers = #tpu.dot_dimension_numbers<[1], [0], [0], [1], [0, 0, 1, 1], [], []>} : vector<8x32xbf16>, vector<32x16xbf16>, vector<8x16xf32> -> vector<8x16xf32>
    %c0_46 = arith.constant 0 : index
    %c0_47 = arith.constant 0 : index
    %68 = vector.load %arg18[%c0_46, %c0_47] : memref<1x16xf32, #tpu.memory_space<vmem>>, vector<1x16xf32>
    %69 = vector.broadcast %68 : vector<1x16xf32> to vector<8x16xf32>
    %70 = arith.addf %67, %69 : vector<8x16xf32>
    %c0_48 = arith.constant 0 : index
    %c0_49 = arith.constant 0 : index
    %71 = vector.load %arg19[%c0_48, %c0_49] : memref<16x32xf32, #tpu.memory_space<vmem>>, vector<16x32xf32>
    %72 = arith.truncf %0 : vector<8x16xf32> to vector<8x16xbf16>
    %73 = arith.truncf %71 : vector<16x32xf32> to vector<16x32xbf16>
    %cst_50 = arith.constant dense<0.000000e+00> : vector<8x32xf32>
    %74 = tpu.matmul %72, %73, %cst_50 {dimension_numbers = #tpu.dot_dimension_numbers<[1], [0], [0], [1], [0, 0, 1, 1], [], []>} : vector<8x16xbf16>, vector<16x32xbf16>, vector<8x32xf32> -> vector<8x32xf32>
    %75 = arith.truncf %74 : vector<8x32xf32> to vector<8x32xbf16>
    %cst_51 = arith.constant dense<0.000000e+00> : vector<8x32xf32>
    %76 = tpu.matmul %2, %75, %cst_51 {dimension_numbers = #tpu.dot_dimension_numbers<[1], [0], [0], [1], [0, 0, 1, 1], [], []>} : vector<8x8xbf16>, vector<8x32xbf16>, vector<8x32xf32> -> vector<8x32xf32>
    %cst_52 = arith.constant 0.000000e+00 : f32
    %77 = vector.broadcast %cst_52 : f32 to vector<8x32xf32>
    %78 = arith.maximumf %76, %77 : vector<8x32xf32>
    %c0_53 = arith.constant 0 : index
    %c0_54 = arith.constant 0 : index
    %79 = vector.load %arg28[%c0_53, %c0_54] : memref<32x2xf32, #tpu.memory_space<vmem>>, vector<32x2xf32>
    %80 = arith.truncf %11 : vector<8x32xf32> to vector<8x32xbf16>
    %81 = arith.truncf %79 : vector<32x2xf32> to vector<32x2xbf16>
    %cst_55 = arith.constant dense<0.000000e+00> : vector<8x2xf32>
    %82 = tpu.matmul %80, %81, %cst_55 {dimension_numbers = #tpu.dot_dimension_numbers<[1], [0], [0], [1], [0, 0, 1, 1], [], []>} : vector<8x32xbf16>, vector<32x2xbf16>, vector<8x2xf32> -> vector<8x2xf32>
    %c0_56 = arith.constant 0 : index
    %c0_57 = arith.constant 0 : index
    %83 = vector.load %arg29[%c0_56, %c0_57] : memref<32x2xf32, #tpu.memory_space<vmem>>, vector<32x2xf32>
    %84 = arith.truncf %78 : vector<8x32xf32> to vector<8x32xbf16>
    %85 = arith.truncf %83 : vector<32x2xf32> to vector<32x2xbf16>
    %cst_58 = arith.constant dense<0.000000e+00> : vector<8x2xf32>
    %86 = tpu.matmul %84, %85, %cst_58 {dimension_numbers = #tpu.dot_dimension_numbers<[1], [0], [0], [1], [0, 0, 1, 1], [], []>} : vector<8x32xbf16>, vector<32x2xbf16>, vector<8x2xf32> -> vector<8x2xf32>
    %87 = arith.addf %82, %86 : vector<8x2xf32>
    %c0_59 = arith.constant 0 : index
    %c0_60 = arith.constant 0 : index
    %88 = vector.load %arg30[%c0_59, %c0_60] : memref<1x2xf32, #tpu.memory_space<vmem>>, vector<1x2xf32>
    %89 = vector.broadcast %88 : vector<1x2xf32> to vector<8x2xf32>
    %90 = arith.addf %87, %89 : vector<8x2xf32>
    %cst_61 = arith.constant 0.00999999977 : f32
    %91 = vector.broadcast %cst_61 : f32 to vector<8x2xf32>
    %92 = arith.mulf %91, %90 : vector<8x2xf32>
    %93 = arith.maximumf %90, %92 : vector<8x2xf32>
    %cst_62 = arith.constant dense<0xFF800000> : vector<8xf32>
    %94 = vector.multi_reduction <maximumf>, %93, %cst_62 [1] : vector<8x2xf32> to vector<8xf32>
    %95 = vector.shape_cast %94 : vector<8xf32> to vector<8x1xf32>
    %96 = vector.broadcast %95 : vector<8x1xf32> to vector<8x2xf32>
    %97 = arith.subf %93, %96 : vector<8x2xf32>
    %98 = math.exp %97 : vector<8x2xf32>
    %cst_63 = arith.constant dense<0.000000e+00> : vector<8xf32>
    %99 = vector.multi_reduction <add>, %98, %cst_63 [1] : vector<8x2xf32> to vector<8xf32>
    %100 = vector.shape_cast %99 : vector<8xf32> to vector<8x1xf32>
    %101 = tpu.reciprocal %100 {approx = true} : vector<8x1xf32> -> vector<8x1xf32>
    %102 = vector.broadcast %101 : vector<8x1xf32> to vector<8x2xf32>
    %103 = arith.mulf %98, %102 : vector<8x2xf32>
    %104 = arith.mulf %103, %103 : vector<8x2xf32>
    %cst_64 = arith.constant dense<0.000000e+00> : vector<8xf32>
    %105 = vector.multi_reduction <add>, %104, %cst_64 [1] : vector<8x2xf32> to vector<8xf32>
    %106 = vector.shape_cast %105 : vector<8xf32> to vector<8x1xf32>
    %107 = math.sqrt %106 : vector<8x1xf32>
    %cst_65 = arith.constant 9.99999996E-13 : f32
    %108 = vector.broadcast %cst_65 : f32 to vector<8x1xf32>
    %109 = arith.maximumf %107, %108 : vector<8x1xf32>
    %110 = tpu.reciprocal %109 {approx = true} : vector<8x1xf32> -> vector<8x1xf32>
    %111 = vector.broadcast %110 : vector<8x1xf32> to vector<8x2xf32>
    %112 = arith.mulf %103, %111 : vector<8x2xf32>
    %113 = vector.extract_strided_slice %112 {offsets = [0, 0], sizes = [8, 1], strides = [1, 1]} : vector<8x2xf32> to vector<8x1xf32>
    %114 = vector.broadcast %113 : vector<8x1xf32> to vector<8x32xf32>
    %115 = arith.mulf %114, %78 : vector<8x32xf32>
    %116 = vector.extract_strided_slice %112 {offsets = [0, 1], sizes = [8, 1], strides = [1, 1]} : vector<8x2xf32> to vector<8x1xf32>
    %117 = vector.broadcast %116 : vector<8x1xf32> to vector<8x32xf32>
    %118 = arith.mulf %117, %11 : vector<8x32xf32>
    %119 = arith.addf %115, %118 : vector<8x32xf32>
    %c0_66 = arith.constant 0 : index
    %c0_67 = arith.constant 0 : index
    %120 = vector.load %arg20[%c0_66, %c0_67] : memref<32x32xf32, #tpu.memory_space<vmem>>, vector<32x32xf32>
    %121 = arith.truncf %119 : vector<8x32xf32> to vector<8x32xbf16>
    %122 = arith.truncf %120 : vector<32x32xf32> to vector<32x32xbf16>
    %cst_68 = arith.constant dense<0.000000e+00> : vector<8x32xf32>
    %123 = tpu.matmul %121, %122, %cst_68 {dimension_numbers = #tpu.dot_dimension_numbers<[1], [0], [0], [1], [0, 0, 1, 1], [], []>} : vector<8x32xbf16>, vector<32x32xbf16>, vector<8x32xf32> -> vector<8x32xf32>
    %124 = arith.truncf %123 : vector<8x32xf32> to vector<8x32xbf16>
    %cst_69 = arith.constant dense<0.000000e+00> : vector<8x32xf32>
    %125 = tpu.matmul %2, %124, %cst_69 {dimension_numbers = #tpu.dot_dimension_numbers<[1], [0], [0], [1], [0, 0, 1, 1], [], []>} : vector<8x8xbf16>, vector<8x32xbf16>, vector<8x32xf32> -> vector<8x32xf32>
    %cst_70 = arith.constant 0.000000e+00 : f32
    %126 = vector.broadcast %cst_70 : f32 to vector<8x32xf32>
    %127 = arith.maximumf %125, %126 : vector<8x32xf32>
    %c0_71 = arith.constant 0 : index
    %c0_72 = arith.constant 0 : index
    %128 = vector.load %arg31[%c0_71, %c0_72] : memref<32x2xf32, #tpu.memory_space<vmem>>, vector<32x2xf32>
    %129 = arith.truncf %20 : vector<8x32xf32> to vector<8x32xbf16>
    %130 = arith.truncf %128 : vector<32x2xf32> to vector<32x2xbf16>
    %cst_73 = arith.constant dense<0.000000e+00> : vector<8x2xf32>
    %131 = tpu.matmul %129, %130, %cst_73 {dimension_numbers = #tpu.dot_dimension_numbers<[1], [0], [0], [1], [0, 0, 1, 1], [], []>} : vector<8x32xbf16>, vector<32x2xbf16>, vector<8x2xf32> -> vector<8x2xf32>
    %c0_74 = arith.constant 0 : index
    %c0_75 = arith.constant 0 : index
    %132 = vector.load %arg32[%c0_74, %c0_75] : memref<32x2xf32, #tpu.memory_space<vmem>>, vector<32x2xf32>
    %133 = arith.truncf %127 : vector<8x32xf32> to vector<8x32xbf16>
    %134 = arith.truncf %132 : vector<32x2xf32> to vector<32x2xbf16>
    %cst_76 = arith.constant dense<0.000000e+00> : vector<8x2xf32>
    %135 = tpu.matmul %133, %134, %cst_76 {dimension_numbers = #tpu.dot_dimension_numbers<[1], [0], [0], [1], [0, 0, 1, 1], [], []>} : vector<8x32xbf16>, vector<32x2xbf16>, vector<8x2xf32> -> vector<8x2xf32>
    %136 = arith.addf %131, %135 : vector<8x2xf32>
    %c0_77 = arith.constant 0 : index
    %c0_78 = arith.constant 0 : index
    %137 = vector.load %arg33[%c0_77, %c0_78] : memref<1x2xf32, #tpu.memory_space<vmem>>, vector<1x2xf32>
    %138 = vector.broadcast %137 : vector<1x2xf32> to vector<8x2xf32>
    %139 = arith.addf %136, %138 : vector<8x2xf32>
    %cst_79 = arith.constant 0.00999999977 : f32
    %140 = vector.broadcast %cst_79 : f32 to vector<8x2xf32>
    %141 = arith.mulf %140, %139 : vector<8x2xf32>
    %142 = arith.maximumf %139, %141 : vector<8x2xf32>
    %cst_80 = arith.constant dense<0xFF800000> : vector<8xf32>
    %143 = vector.multi_reduction <maximumf>, %142, %cst_80 [1] : vector<8x2xf32> to vector<8xf32>
    %144 = vector.shape_cast %143 : vector<8xf32> to vector<8x1xf32>
    %145 = vector.broadcast %144 : vector<8x1xf32> to vector<8x2xf32>
    %146 = arith.subf %142, %145 : vector<8x2xf32>
    %147 = math.exp %146 : vector<8x2xf32>
    %cst_81 = arith.constant dense<0.000000e+00> : vector<8xf32>
    %148 = vector.multi_reduction <add>, %147, %cst_81 [1] : vector<8x2xf32> to vector<8xf32>
    %149 = vector.shape_cast %148 : vector<8xf32> to vector<8x1xf32>
    %150 = tpu.reciprocal %149 {approx = true} : vector<8x1xf32> -> vector<8x1xf32>
    %151 = vector.broadcast %150 : vector<8x1xf32> to vector<8x2xf32>
    %152 = arith.mulf %147, %151 : vector<8x2xf32>
    %153 = arith.mulf %152, %152 : vector<8x2xf32>
    %cst_82 = arith.constant dense<0.000000e+00> : vector<8xf32>
    %154 = vector.multi_reduction <add>, %153, %cst_82 [1] : vector<8x2xf32> to vector<8xf32>
    %155 = vector.shape_cast %154 : vector<8xf32> to vector<8x1xf32>
    %156 = math.sqrt %155 : vector<8x1xf32>
    %cst_83 = arith.constant 9.99999996E-13 : f32
    %157 = vector.broadcast %cst_83 : f32 to vector<8x1xf32>
    %158 = arith.maximumf %156, %157 : vector<8x1xf32>
    %159 = tpu.reciprocal %158 {approx = true} : vector<8x1xf32> -> vector<8x1xf32>
    %160 = vector.broadcast %159 : vector<8x1xf32> to vector<8x2xf32>
    %161 = arith.mulf %152, %160 : vector<8x2xf32>
    %162 = vector.extract_strided_slice %161 {offsets = [0, 0], sizes = [8, 1], strides = [1, 1]} : vector<8x2xf32> to vector<8x1xf32>
    %163 = vector.broadcast %162 : vector<8x1xf32> to vector<8x32xf32>
    %164 = arith.mulf %163, %127 : vector<8x32xf32>
    %165 = vector.extract_strided_slice %161 {offsets = [0, 1], sizes = [8, 1], strides = [1, 1]} : vector<8x2xf32> to vector<8x1xf32>
    %166 = vector.broadcast %165 : vector<8x1xf32> to vector<8x32xf32>
    %167 = arith.mulf %166, %20 : vector<8x32xf32>
    %168 = arith.addf %164, %167 : vector<8x32xf32>
    %c0_84 = arith.constant 0 : index
    %c0_85 = arith.constant 0 : index
    %169 = vector.load %arg21[%c0_84, %c0_85] : memref<32x16xf32, #tpu.memory_space<vmem>>, vector<32x16xf32>
    %170 = arith.truncf %168 : vector<8x32xf32> to vector<8x32xbf16>
    %171 = arith.truncf %169 : vector<32x16xf32> to vector<32x16xbf16>
    %cst_86 = arith.constant dense<0.000000e+00> : vector<8x16xf32>
    %172 = tpu.matmul %170, %171, %cst_86 {dimension_numbers = #tpu.dot_dimension_numbers<[1], [0], [0], [1], [0, 0, 1, 1], [], []>} : vector<8x32xbf16>, vector<32x16xbf16>, vector<8x16xf32> -> vector<8x16xf32>
    %173 = arith.truncf %172 : vector<8x16xf32> to vector<8x16xbf16>
    %cst_87 = arith.constant dense<0.000000e+00> : vector<8x16xf32>
    %174 = tpu.matmul %2, %173, %cst_87 {dimension_numbers = #tpu.dot_dimension_numbers<[1], [0], [0], [1], [0, 0, 1, 1], [], []>} : vector<8x8xbf16>, vector<8x16xbf16>, vector<8x16xf32> -> vector<8x16xf32>
    %cst_88 = arith.constant 0.000000e+00 : f32
    %175 = vector.broadcast %cst_88 : f32 to vector<8x16xf32>
    %176 = arith.maximumf %174, %175 : vector<8x16xf32>
    %c0_89 = arith.constant 0 : index
    %c0_90 = arith.constant 0 : index
    %177 = vector.load %arg34[%c0_89, %c0_90] : memref<16x2xf32, #tpu.memory_space<vmem>>, vector<16x2xf32>
    %178 = arith.truncf %29 : vector<8x16xf32> to vector<8x16xbf16>
    %179 = arith.truncf %177 : vector<16x2xf32> to vector<16x2xbf16>
    %cst_91 = arith.constant dense<0.000000e+00> : vector<8x2xf32>
    %180 = tpu.matmul %178, %179, %cst_91 {dimension_numbers = #tpu.dot_dimension_numbers<[1], [0], [0], [1], [0, 0, 1, 1], [], []>} : vector<8x16xbf16>, vector<16x2xbf16>, vector<8x2xf32> -> vector<8x2xf32>
    %c0_92 = arith.constant 0 : index
    %c0_93 = arith.constant 0 : index
    %181 = vector.load %arg35[%c0_92, %c0_93] : memref<16x2xf32, #tpu.memory_space<vmem>>, vector<16x2xf32>
    %182 = arith.truncf %176 : vector<8x16xf32> to vector<8x16xbf16>
    %183 = arith.truncf %181 : vector<16x2xf32> to vector<16x2xbf16>
    %cst_94 = arith.constant dense<0.000000e+00> : vector<8x2xf32>
    %184 = tpu.matmul %182, %183, %cst_94 {dimension_numbers = #tpu.dot_dimension_numbers<[1], [0], [0], [1], [0, 0, 1, 1], [], []>} : vector<8x16xbf16>, vector<16x2xbf16>, vector<8x2xf32> -> vector<8x2xf32>
    %185 = arith.addf %180, %184 : vector<8x2xf32>
    %c0_95 = arith.constant 0 : index
    %c0_96 = arith.constant 0 : index
    %186 = vector.load %arg36[%c0_95, %c0_96] : memref<1x2xf32, #tpu.memory_space<vmem>>, vector<1x2xf32>
    %187 = vector.broadcast %186 : vector<1x2xf32> to vector<8x2xf32>
    %188 = arith.addf %185, %187 : vector<8x2xf32>
    %cst_97 = arith.constant 0.00999999977 : f32
    %189 = vector.broadcast %cst_97 : f32 to vector<8x2xf32>
    %190 = arith.mulf %189, %188 : vector<8x2xf32>
    %191 = arith.maximumf %188, %190 : vector<8x2xf32>
    %cst_98 = arith.constant dense<0xFF800000> : vector<8xf32>
    %192 = vector.multi_reduction <maximumf>, %191, %cst_98 [1] : vector<8x2xf32> to vector<8xf32>
    %193 = vector.shape_cast %192 : vector<8xf32> to vector<8x1xf32>
    %194 = vector.broadcast %193 : vector<8x1xf32> to vector<8x2xf32>
    %195 = arith.subf %191, %194 : vector<8x2xf32>
    %196 = math.exp %195 : vector<8x2xf32>
    %cst_99 = arith.constant dense<0.000000e+00> : vector<8xf32>
    %197 = vector.multi_reduction <add>, %196, %cst_99 [1] : vector<8x2xf32> to vector<8xf32>
    %198 = vector.shape_cast %197 : vector<8xf32> to vector<8x1xf32>
    %199 = tpu.reciprocal %198 {approx = true} : vector<8x1xf32> -> vector<8x1xf32>
    %200 = vector.broadcast %199 : vector<8x1xf32> to vector<8x2xf32>
    %201 = arith.mulf %196, %200 : vector<8x2xf32>
    %202 = arith.mulf %201, %201 : vector<8x2xf32>
    %cst_100 = arith.constant dense<0.000000e+00> : vector<8xf32>
    %203 = vector.multi_reduction <add>, %202, %cst_100 [1] : vector<8x2xf32> to vector<8xf32>
    %204 = vector.shape_cast %203 : vector<8xf32> to vector<8x1xf32>
    %205 = math.sqrt %204 : vector<8x1xf32>
    %cst_101 = arith.constant 9.99999996E-13 : f32
    %206 = vector.broadcast %cst_101 : f32 to vector<8x1xf32>
    %207 = arith.maximumf %205, %206 : vector<8x1xf32>
    %208 = tpu.reciprocal %207 {approx = true} : vector<8x1xf32> -> vector<8x1xf32>
    %209 = vector.broadcast %208 : vector<8x1xf32> to vector<8x2xf32>
    %210 = arith.mulf %201, %209 : vector<8x2xf32>
    %211 = vector.extract_strided_slice %210 {offsets = [0, 0], sizes = [8, 1], strides = [1, 1]} : vector<8x2xf32> to vector<8x1xf32>
    %212 = vector.broadcast %211 : vector<8x1xf32> to vector<8x16xf32>
    %213 = arith.mulf %212, %176 : vector<8x16xf32>
    %214 = vector.extract_strided_slice %210 {offsets = [0, 1], sizes = [8, 1], strides = [1, 1]} : vector<8x2xf32> to vector<8x1xf32>
    %215 = vector.broadcast %214 : vector<8x1xf32> to vector<8x16xf32>
    %216 = arith.mulf %215, %29 : vector<8x16xf32>
    %217 = arith.addf %213, %216 : vector<8x16xf32>
    %c0_102 = arith.constant 0 : index
    %c0_103 = arith.constant 0 : index
    %218 = vector.load %arg22[%c0_102, %c0_103] : memref<16x8xf32, #tpu.memory_space<vmem>>, vector<16x8xf32>
    %219 = arith.truncf %217 : vector<8x16xf32> to vector<8x16xbf16>
    %220 = arith.truncf %218 : vector<16x8xf32> to vector<16x8xbf16>
    %cst_104 = arith.constant dense<0.000000e+00> : vector<8x8xf32>
    %221 = tpu.matmul %219, %220, %cst_104 {dimension_numbers = #tpu.dot_dimension_numbers<[1], [0], [0], [1], [0, 0, 1, 1], [], []>} : vector<8x16xbf16>, vector<16x8xbf16>, vector<8x8xf32> -> vector<8x8xf32>
    %222 = arith.truncf %221 : vector<8x8xf32> to vector<8x8xbf16>
    %cst_105 = arith.constant dense<0.000000e+00> : vector<8x8xf32>
    %223 = tpu.matmul %2, %222, %cst_105 {dimension_numbers = #tpu.dot_dimension_numbers<[1], [0], [0], [1], [0, 0, 1, 1], [], []>} : vector<8x8xbf16>, vector<8x8xbf16>, vector<8x8xf32> -> vector<8x8xf32>
    %cst_106 = arith.constant 0.000000e+00 : f32
    %224 = vector.broadcast %cst_106 : f32 to vector<8x8xf32>
    %225 = arith.maximumf %223, %224 : vector<8x8xf32>
    %c0_107 = arith.constant 0 : index
    %c0_108 = arith.constant 0 : index
    %226 = vector.load %arg37[%c0_107, %c0_108] : memref<32x5xf32, #tpu.memory_space<vmem>>, vector<32x5xf32>
    %227 = arith.truncf %78 : vector<8x32xf32> to vector<8x32xbf16>
    %228 = arith.truncf %226 : vector<32x5xf32> to vector<32x5xbf16>
    %cst_109 = arith.constant dense<0.000000e+00> : vector<8x5xf32>
    %229 = tpu.matmul %227, %228, %cst_109 {dimension_numbers = #tpu.dot_dimension_numbers<[1], [0], [0], [1], [0, 0, 1, 1], [], []>} : vector<8x32xbf16>, vector<32x5xbf16>, vector<8x5xf32> -> vector<8x5xf32>
    %c0_110 = arith.constant 0 : index
    %c0_111 = arith.constant 0 : index
    %230 = vector.load %arg38[%c0_110, %c0_111] : memref<32x5xf32, #tpu.memory_space<vmem>>, vector<32x5xf32>
    %231 = arith.truncf %127 : vector<8x32xf32> to vector<8x32xbf16>
    %232 = arith.truncf %230 : vector<32x5xf32> to vector<32x5xbf16>
    %cst_112 = arith.constant dense<0.000000e+00> : vector<8x5xf32>
    %233 = tpu.matmul %231, %232, %cst_112 {dimension_numbers = #tpu.dot_dimension_numbers<[1], [0], [0], [1], [0, 0, 1, 1], [], []>} : vector<8x32xbf16>, vector<32x5xbf16>, vector<8x5xf32> -> vector<8x5xf32>
    %234 = arith.addf %229, %233 : vector<8x5xf32>
    %c0_113 = arith.constant 0 : index
    %c0_114 = arith.constant 0 : index
    %235 = vector.load %arg39[%c0_113, %c0_114] : memref<16x5xf32, #tpu.memory_space<vmem>>, vector<16x5xf32>
    %236 = arith.truncf %176 : vector<8x16xf32> to vector<8x16xbf16>
    %237 = arith.truncf %235 : vector<16x5xf32> to vector<16x5xbf16>
    %cst_115 = arith.constant dense<0.000000e+00> : vector<8x5xf32>
    %238 = tpu.matmul %236, %237, %cst_115 {dimension_numbers = #tpu.dot_dimension_numbers<[1], [0], [0], [1], [0, 0, 1, 1], [], []>} : vector<8x16xbf16>, vector<16x5xbf16>, vector<8x5xf32> -> vector<8x5xf32>
    %239 = arith.addf %234, %238 : vector<8x5xf32>
    %c0_116 = arith.constant 0 : index
    %c0_117 = arith.constant 0 : index
    %240 = vector.load %arg40[%c0_116, %c0_117] : memref<8x5xf32, #tpu.memory_space<vmem>>, vector<8x5xf32>
    %241 = arith.truncf %225 : vector<8x8xf32> to vector<8x8xbf16>
    %242 = arith.truncf %240 : vector<8x5xf32> to vector<8x5xbf16>
    %cst_118 = arith.constant dense<0.000000e+00> : vector<8x5xf32>
    %243 = tpu.matmul %241, %242, %cst_118 {dimension_numbers = #tpu.dot_dimension_numbers<[1], [0], [0], [1], [0, 0, 1, 1], [], []>} : vector<8x8xbf16>, vector<8x5xbf16>, vector<8x5xf32> -> vector<8x5xf32>
    %244 = arith.addf %239, %243 : vector<8x5xf32>
    %c0_119 = arith.constant 0 : index
    %c0_120 = arith.constant 0 : index
    %245 = vector.load %arg41[%c0_119, %c0_120] : memref<8x5xf32, #tpu.memory_space<vmem>>, vector<8x5xf32>
    %246 = arith.truncf %36 : vector<8x8xf32> to vector<8x8xbf16>
    %247 = arith.truncf %245 : vector<8x5xf32> to vector<8x5xbf16>
    %cst_121 = arith.constant dense<0.000000e+00> : vector<8x5xf32>
    %248 = tpu.matmul %246, %247, %cst_121 {dimension_numbers = #tpu.dot_dimension_numbers<[1], [0], [0], [1], [0, 0, 1, 1], [], []>} : vector<8x8xbf16>, vector<8x5xbf16>, vector<8x5xf32> -> vector<8x5xf32>
    %249 = arith.addf %244, %248 : vector<8x5xf32>
    %c0_122 = arith.constant 0 : index
    %c0_123 = arith.constant 0 : index
    %250 = vector.load %arg42[%c0_122, %c0_123] : memref<1x5xf32, #tpu.memory_space<vmem>>, vector<1x5xf32>
    %251 = vector.broadcast %250 : vector<1x5xf32> to vector<8x5xf32>
    %252 = arith.addf %249, %251 : vector<8x5xf32>
    %cst_124 = arith.constant 0.00999999977 : f32
    %253 = vector.broadcast %cst_124 : f32 to vector<8x5xf32>
    %254 = arith.mulf %253, %252 : vector<8x5xf32>
    %255 = arith.maximumf %252, %254 : vector<8x5xf32>
    %cst_125 = arith.constant dense<0xFF800000> : vector<8xf32>
    %256 = vector.multi_reduction <maximumf>, %255, %cst_125 [1] : vector<8x5xf32> to vector<8xf32>
    %257 = vector.shape_cast %256 : vector<8xf32> to vector<8x1xf32>
    %258 = vector.broadcast %257 : vector<8x1xf32> to vector<8x5xf32>
    %259 = arith.subf %255, %258 : vector<8x5xf32>
    %260 = math.exp %259 : vector<8x5xf32>
    %cst_126 = arith.constant dense<0.000000e+00> : vector<8xf32>
    %261 = vector.multi_reduction <add>, %260, %cst_126 [1] : vector<8x5xf32> to vector<8xf32>
    %262 = vector.shape_cast %261 : vector<8xf32> to vector<8x1xf32>
    %263 = tpu.reciprocal %262 {approx = true} : vector<8x1xf32> -> vector<8x1xf32>
    %264 = vector.broadcast %263 : vector<8x1xf32> to vector<8x5xf32>
    %265 = arith.mulf %260, %264 : vector<8x5xf32>
    %266 = arith.mulf %265, %265 : vector<8x5xf32>
    %cst_127 = arith.constant dense<0.000000e+00> : vector<8xf32>
    %267 = vector.multi_reduction <add>, %266, %cst_127 [1] : vector<8x5xf32> to vector<8xf32>
    %268 = vector.shape_cast %267 : vector<8xf32> to vector<8x1xf32>
    %269 = math.sqrt %268 : vector<8x1xf32>
    %cst_128 = arith.constant 9.99999996E-13 : f32
    %270 = vector.broadcast %cst_128 : f32 to vector<8x1xf32>
    %271 = arith.maximumf %269, %270 : vector<8x1xf32>
    %272 = tpu.reciprocal %271 {approx = true} : vector<8x1xf32> -> vector<8x1xf32>
    %273 = vector.broadcast %272 : vector<8x1xf32> to vector<8x5xf32>
    %274 = arith.mulf %265, %273 : vector<8x5xf32>
    %275 = vector.extract_strided_slice %274 {offsets = [0, 0], sizes = [8, 1], strides = [1, 1]} : vector<8x5xf32> to vector<8x1xf32>
    %c0_129 = arith.constant 0 : index
    %c0_130 = arith.constant 0 : index
    %276 = vector.load %arg23[%c0_129, %c0_130] : memref<32x4xf32, #tpu.memory_space<vmem>>, vector<32x4xf32>
    %277 = arith.truncf %78 : vector<8x32xf32> to vector<8x32xbf16>
    %278 = arith.truncf %276 : vector<32x4xf32> to vector<32x4xbf16>
    %cst_131 = arith.constant dense<0.000000e+00> : vector<8x4xf32>
    %279 = tpu.matmul %277, %278, %cst_131 {dimension_numbers = #tpu.dot_dimension_numbers<[1], [0], [0], [1], [0, 0, 1, 1], [], []>} : vector<8x32xbf16>, vector<32x4xbf16>, vector<8x4xf32> -> vector<8x4xf32>
    %280 = vector.broadcast %275 : vector<8x1xf32> to vector<8x4xf32>
    %281 = arith.mulf %280, %279 : vector<8x4xf32>
    %282 = vector.extract_strided_slice %274 {offsets = [0, 1], sizes = [8, 1], strides = [1, 1]} : vector<8x5xf32> to vector<8x1xf32>
    %c0_132 = arith.constant 0 : index
    %c0_133 = arith.constant 0 : index
    %283 = vector.load %arg24[%c0_132, %c0_133] : memref<32x4xf32, #tpu.memory_space<vmem>>, vector<32x4xf32>
    %284 = arith.truncf %127 : vector<8x32xf32> to vector<8x32xbf16>
    %285 = arith.truncf %283 : vector<32x4xf32> to vector<32x4xbf16>
    %cst_134 = arith.constant dense<0.000000e+00> : vector<8x4xf32>
    %286 = tpu.matmul %284, %285, %cst_134 {dimension_numbers = #tpu.dot_dimension_numbers<[1], [0], [0], [1], [0, 0, 1, 1], [], []>} : vector<8x32xbf16>, vector<32x4xbf16>, vector<8x4xf32> -> vector<8x4xf32>
    %287 = vector.broadcast %282 : vector<8x1xf32> to vector<8x4xf32>
    %288 = arith.mulf %287, %286 : vector<8x4xf32>
    %289 = arith.addf %281, %288 : vector<8x4xf32>
    %290 = vector.extract_strided_slice %274 {offsets = [0, 2], sizes = [8, 1], strides = [1, 1]} : vector<8x5xf32> to vector<8x1xf32>
    %c0_135 = arith.constant 0 : index
    %c0_136 = arith.constant 0 : index
    %291 = vector.load %arg25[%c0_135, %c0_136] : memref<16x4xf32, #tpu.memory_space<vmem>>, vector<16x4xf32>
    %292 = arith.truncf %176 : vector<8x16xf32> to vector<8x16xbf16>
    %293 = arith.truncf %291 : vector<16x4xf32> to vector<16x4xbf16>
    %cst_137 = arith.constant dense<0.000000e+00> : vector<8x4xf32>
    %294 = tpu.matmul %292, %293, %cst_137 {dimension_numbers = #tpu.dot_dimension_numbers<[1], [0], [0], [1], [0, 0, 1, 1], [], []>} : vector<8x16xbf16>, vector<16x4xbf16>, vector<8x4xf32> -> vector<8x4xf32>
    %295 = vector.broadcast %290 : vector<8x1xf32> to vector<8x4xf32>
    %296 = arith.mulf %295, %294 : vector<8x4xf32>
    %297 = arith.addf %289, %296 : vector<8x4xf32>
    %298 = vector.extract_strided_slice %274 {offsets = [0, 3], sizes = [8, 1], strides = [1, 1]} : vector<8x5xf32> to vector<8x1xf32>
    %c0_138 = arith.constant 0 : index
    %c0_139 = arith.constant 0 : index
    %299 = vector.load %arg26[%c0_138, %c0_139] : memref<8x4xf32, #tpu.memory_space<vmem>>, vector<8x4xf32>
    %300 = arith.truncf %225 : vector<8x8xf32> to vector<8x8xbf16>
    %301 = arith.truncf %299 : vector<8x4xf32> to vector<8x4xbf16>
    %cst_140 = arith.constant dense<0.000000e+00> : vector<8x4xf32>
    %302 = tpu.matmul %300, %301, %cst_140 {dimension_numbers = #tpu.dot_dimension_numbers<[1], [0], [0], [1], [0, 0, 1, 1], [], []>} : vector<8x8xbf16>, vector<8x4xbf16>, vector<8x4xf32> -> vector<8x4xf32>
    %303 = vector.broadcast %298 : vector<8x1xf32> to vector<8x4xf32>
    %304 = arith.mulf %303, %302 : vector<8x4xf32>
    %305 = arith.addf %297, %304 : vector<8x4xf32>
    %306 = vector.extract_strided_slice %274 {offsets = [0, 4], sizes = [8, 1], strides = [1, 1]} : vector<8x5xf32> to vector<8x1xf32>
    %c0_141 = arith.constant 0 : index
    %c0_142 = arith.constant 0 : index
    %307 = vector.load %arg27[%c0_141, %c0_142] : memref<8x4xf32, #tpu.memory_space<vmem>>, vector<8x4xf32>
    %308 = arith.truncf %36 : vector<8x8xf32> to vector<8x8xbf16>
    %309 = arith.truncf %307 : vector<8x4xf32> to vector<8x4xbf16>
    %cst_143 = arith.constant dense<0.000000e+00> : vector<8x4xf32>
    %310 = tpu.matmul %308, %309, %cst_143 {dimension_numbers = #tpu.dot_dimension_numbers<[1], [0], [0], [1], [0, 0, 1, 1], [], []>} : vector<8x8xbf16>, vector<8x4xbf16>, vector<8x4xf32> -> vector<8x4xf32>
    %311 = vector.broadcast %306 : vector<8x1xf32> to vector<8x4xf32>
    %312 = arith.mulf %311, %310 : vector<8x4xf32>
    %313 = arith.addf %305, %312 : vector<8x4xf32>
    %314 = arith.truncf %313 : vector<8x4xf32> to vector<8x4xbf16>
    %cst_144 = arith.constant dense<0.000000e+00> : vector<8x4xf32>
    %315 = tpu.matmul %2, %314, %cst_144 {dimension_numbers = #tpu.dot_dimension_numbers<[1], [0], [0], [1], [0, 0, 1, 1], [], []>} : vector<8x8xbf16>, vector<8x4xbf16>, vector<8x4xf32> -> vector<8x4xf32>
    %cst_145 = arith.constant dense<0xFF800000> : vector<8xf32>
    %316 = vector.multi_reduction <maximumf>, %315, %cst_145 [1] : vector<8x4xf32> to vector<8xf32>
    %317 = vector.shape_cast %316 : vector<8xf32> to vector<8x1xf32>
    %318 = vector.broadcast %317 : vector<8x1xf32> to vector<8x4xf32>
    %319 = arith.subf %315, %318 : vector<8x4xf32>
    %320 = math.exp %319 : vector<8x4xf32>
    %cst_146 = arith.constant dense<0.000000e+00> : vector<8xf32>
    %321 = vector.multi_reduction <add>, %320, %cst_146 [1] : vector<8x4xf32> to vector<8xf32>
    %322 = vector.shape_cast %321 : vector<8xf32> to vector<8x1xf32>
    %323 = tpu.reciprocal %322 {approx = true} : vector<8x1xf32> -> vector<8x1xf32>
    %324 = vector.broadcast %323 : vector<8x1xf32> to vector<8x4xf32>
    %325 = arith.mulf %320, %324 : vector<8x4xf32>
    %c0_147 = arith.constant 0 : index
    %c0_148 = arith.constant 0 : index
    %326 = vector.load %arg43[%c0_147, %c0_148] : memref<8x4xf32, #tpu.memory_space<vmem>>, vector<8x4xf32>
    %327 = arith.mulf %36, %36 : vector<8x8xf32>
    %cst_149 = arith.constant dense<0.000000e+00> : vector<8xf32>
    %328 = vector.multi_reduction <add>, %327, %cst_149 [1] : vector<8x8xf32> to vector<8xf32>
    %329 = vector.shape_cast %328 : vector<8xf32> to vector<8x1xf32>
    %330 = arith.mulf %326, %326 : vector<8x4xf32>
    %cst_150 = arith.constant dense<0.000000e+00> : vector<4xf32>
    %331 = vector.multi_reduction <add>, %330, %cst_150 [0] : vector<8x4xf32> to vector<4xf32>
    %332 = vector.shape_cast %331 : vector<4xf32> to vector<1x4xf32>
    %333 = vector.broadcast %329 : vector<8x1xf32> to vector<8x4xf32>
    %334 = vector.broadcast %332 : vector<1x4xf32> to vector<8x4xf32>
    %335 = arith.addf %333, %334 : vector<8x4xf32>
    %336 = arith.truncf %36 : vector<8x8xf32> to vector<8x8xbf16>
    %337 = arith.truncf %326 : vector<8x4xf32> to vector<8x4xbf16>
    %cst_151 = arith.constant dense<0.000000e+00> : vector<8x4xf32>
    %338 = tpu.matmul %336, %337, %cst_151 {dimension_numbers = #tpu.dot_dimension_numbers<[1], [0], [0], [1], [0, 0, 1, 1], [], []>} : vector<8x8xbf16>, vector<8x4xbf16>, vector<8x4xf32> -> vector<8x4xf32>
    %cst_152 = arith.constant 2.000000e+00 : f32
    %339 = vector.broadcast %cst_152 : f32 to vector<8x4xf32>
    %340 = arith.mulf %339, %338 : vector<8x4xf32>
    %341 = arith.subf %335, %340 : vector<8x4xf32>
    %cst_153 = arith.constant 0.000000e+00 : f32
    %342 = vector.broadcast %cst_153 : f32 to vector<8x4xf32>
    %343 = arith.maximumf %341, %342 : vector<8x4xf32>
    %cst_154 = arith.constant 1.000000e+00 : f32
    %344 = vector.broadcast %cst_154 : f32 to vector<8x4xf32>
    %345 = arith.mulf %343, %344 : vector<8x4xf32>
    %cst_155 = arith.constant 1.000000e+00 : f32
    %346 = vector.broadcast %cst_155 : f32 to vector<8x4xf32>
    %347 = arith.addf %346, %345 : vector<8x4xf32>
    %348 = tpu.reciprocal %347 {approx = true} : vector<8x4xf32> -> vector<8x4xf32>
    %cst_156 = arith.constant dense<0.000000e+00> : vector<8xf32>
    %349 = vector.multi_reduction <add>, %348, %cst_156 [1] : vector<8x4xf32> to vector<8xf32>
    %350 = vector.shape_cast %349 : vector<8xf32> to vector<8x1xf32>
    %351 = tpu.reciprocal %350 {approx = true} : vector<8x1xf32> -> vector<8x1xf32>
    %352 = vector.broadcast %351 : vector<8x1xf32> to vector<8x4xf32>
    %353 = arith.mulf %348, %352 : vector<8x4xf32>
    %c0_157 = arith.constant 0 : index
    %c0_158 = arith.constant 0 : index
    %354 = vector.load %arg44[%c0_157, %c0_158] : memref<8x16xf32, #tpu.memory_space<vmem>>, vector<8x16xf32>
    tpu.vector_store %arg44[%c0_157, %c0_158], %70 {strides = array<i32>} : memref<8x16xf32, #tpu.memory_space<vmem>>, vector<8x16xf32>,
    %c0_159 = arith.constant 0 : index
    %c0_160 = arith.constant 0 : index
    %355 = vector.load %arg45[%c0_159, %c0_160] : memref<8x4xf32, #tpu.memory_space<vmem>>, vector<8x4xf32>
    tpu.vector_store %arg45[%c0_159, %c0_160], %353 {strides = array<i32>} : memref<8x4xf32, #tpu.memory_space<vmem>>, vector<8x4xf32>,
    %c0_161 = arith.constant 0 : index
    %c0_162 = arith.constant 0 : index
    %356 = vector.load %arg46[%c0_161, %c0_162] : memref<8x4xf32, #tpu.memory_space<vmem>>, vector<8x4xf32>
    tpu.vector_store %arg46[%c0_161, %c0_162], %325 {strides = array<i32>} : memref<8x4xf32, #tpu.memory_space<vmem>>, vector<8x4xf32>,
    %c0_163 = arith.constant 0 : index
    %c0_164 = arith.constant 0 : index
    %357 = vector.load %arg47[%c0_163, %c0_164] : memref<8x8xf32, #tpu.memory_space<vmem>>, vector<8x8xf32>
    tpu.vector_store %arg47[%c0_163, %c0_164], %36 {strides = array<i32>} : memref<8x8xf32, #tpu.memory_space<vmem>>, vector<8x8xf32>,
    return
  }
  func.func @transform_0(%arg0: i32) -> (i32, i32) {
    %c0_i32 = arith.constant 0 : i32
    %c0_i32_0 = arith.constant 0 : i32
    %c0_i32_1 = arith.constant 0 : i32
    return %c0_i32, %c0_i32_0 : i32, i32
  }
  func.func @transform_1(%arg0: i32) -> (i32, i32) {
    %c0_i32 = arith.constant 0 : i32
    %c0_i32_0 = arith.constant 0 : i32
    %c0_i32_1 = arith.constant 0 : i32
    return %c0_i32, %c0_i32_0 : i32, i32
  }
  func.func @transform_2(%arg0: i32) -> (i32, i32) {
    %c0_i32 = arith.constant 0 : i32
    %c0_i32_0 = arith.constant 0 : i32
    %c0_i32_1 = arith.constant 0 : i32
    return %c0_i32, %c0_i32_0 : i32, i32
  }
  func.func @transform_3(%arg0: i32) -> (i32, i32) {
    %c0_i32 = arith.constant 0 : i32
    %c0_i32_0 = arith.constant 0 : i32
    %c0_i32_1 = arith.constant 0 : i32
    return %c0_i32, %c0_i32_0 : i32, i32
  }
  func.func @transform_4(%arg0: i32) -> (i32, i32) {
    %c0_i32 = arith.constant 0 : i32
    %c0_i32_0 = arith.constant 0 : i32
    %c0_i32_1 = arith.constant 0 : i32
    return %c0_i32, %c0_i32_0 : i32, i32
  }
  func.func @transform_5(%arg0: i32) -> (i32, i32) {
    %c0_i32 = arith.constant 0 : i32
    %c0_i32_0 = arith.constant 0 : i32
    %c0_i32_1 = arith.constant 0 : i32
    return %c0_i32, %c0_i32_0 : i32, i32
  }
  func.func @transform_6(%arg0: i32) -> (i32, i32) {
    %c0_i32 = arith.constant 0 : i32
    %c0_i32_0 = arith.constant 0 : i32
    %c0_i32_1 = arith.constant 0 : i32
    return %c0_i32, %c0_i32_0 : i32, i32
  }
  func.func @transform_7(%arg0: i32) -> (i32, i32) {
    %c0_i32 = arith.constant 0 : i32
    %c0_i32_0 = arith.constant 0 : i32
    %c0_i32_1 = arith.constant 0 : i32
    return %c0_i32, %c0_i32_0 : i32, i32
  }
  func.func @transform_8(%arg0: i32) -> (i32, i32) {
    %c0_i32 = arith.constant 0 : i32
    %c0_i32_0 = arith.constant 0 : i32
    %c0_i32_1 = arith.constant 0 : i32
    return %c0_i32, %c0_i32_0 : i32, i32
  }
  func.func @transform_9(%arg0: i32) -> (i32, i32) {
    %c0_i32 = arith.constant 0 : i32
    %c0_i32_0 = arith.constant 0 : i32
    %c0_i32_1 = arith.constant 0 : i32
    return %c0_i32, %c0_i32_0 : i32, i32
  }
  func.func @transform_10(%arg0: i32) -> (i32, i32) {
    %c0_i32 = arith.constant 0 : i32
    %c0_i32_0 = arith.constant 0 : i32
    %c0_i32_1 = arith.constant 0 : i32
    return %c0_i32, %c0_i32_0 : i32, i32
  }
  func.func @transform_11(%arg0: i32) -> (i32, i32) {
    %c0_i32 = arith.constant 0 : i32
    %c0_i32_0 = arith.constant 0 : i32
    %c0_i32_1 = arith.constant 0 : i32
    return %c0_i32, %c0_i32_0 : i32, i32
  }
  func.func @transform_12(%arg0: i32) -> (i32, i32) {
    %c0_i32 = arith.constant 0 : i32
    %c0_i32_0 = arith.constant 0 : i32
    %c0_i32_1 = arith.constant 0 : i32
    return %c0_i32, %c0_i32_0 : i32, i32
  }
  func.func @transform_13(%arg0: i32) -> (i32, i32) {
    %c0_i32 = arith.constant 0 : i32
    %c0_i32_0 = arith.constant 0 : i32
    %c0_i32_1 = arith.constant 0 : i32
    return %c0_i32, %c0_i32_0 : i32, i32
  }
  func.func @transform_14(%arg0: i32) -> (i32, i32) {
    %c0_i32 = arith.constant 0 : i32
    %c0_i32_0 = arith.constant 0 : i32
    %c0_i32_1 = arith.constant 0 : i32
    return %c0_i32, %c0_i32_0 : i32, i32
  }
  func.func @transform_15(%arg0: i32) -> (i32, i32) {
    %c0_i32 = arith.constant 0 : i32
    %c0_i32_0 = arith.constant 0 : i32
    %c0_i32_1 = arith.constant 0 : i32
    return %c0_i32, %c0_i32_0 : i32, i32
  }
  func.func @transform_16(%arg0: i32) -> (i32, i32) {
    %c0_i32 = arith.constant 0 : i32
    %c0_i32_0 = arith.constant 0 : i32
    %c0_i32_1 = arith.constant 0 : i32
    return %c0_i32, %c0_i32_0 : i32, i32
  }
  func.func @transform_17(%arg0: i32) -> (i32, i32) {
    %c0_i32 = arith.constant 0 : i32
    %c0_i32_0 = arith.constant 0 : i32
    %c0_i32_1 = arith.constant 0 : i32
    return %c0_i32, %c0_i32_0 : i32, i32
  }
  func.func @transform_18(%arg0: i32) -> (i32, i32) {
    %c0_i32 = arith.constant 0 : i32
    %c0_i32_0 = arith.constant 0 : i32
    %c0_i32_1 = arith.constant 0 : i32
    return %c0_i32, %c0_i32_0 : i32, i32
  }
  func.func @transform_19(%arg0: i32) -> (i32, i32) {
    %c0_i32 = arith.constant 0 : i32
    %c0_i32_0 = arith.constant 0 : i32
    %c0_i32_1 = arith.constant 0 : i32
    return %c0_i32, %c0_i32_0 : i32, i32
  }
  func.func @transform_20(%arg0: i32) -> (i32, i32) {
    %c0_i32 = arith.constant 0 : i32
    %c0_i32_0 = arith.constant 0 : i32
    %c0_i32_1 = arith.constant 0 : i32
    return %c0_i32, %c0_i32_0 : i32, i32
  }
  func.func @transform_21(%arg0: i32) -> (i32, i32) {
    %c0_i32 = arith.constant 0 : i32
    %c0_i32_0 = arith.constant 0 : i32
    %c0_i32_1 = arith.constant 0 : i32
    return %c0_i32, %c0_i32_0 : i32, i32
  }
  func.func @transform_22(%arg0: i32) -> (i32, i32) {
    %c0_i32 = arith.constant 0 : i32
    %c0_i32_0 = arith.constant 0 : i32
    %c0_i32_1 = arith.constant 0 : i32
    return %c0_i32, %c0_i32_0 : i32, i32
  }
  func.func @transform_23(%arg0: i32) -> (i32, i32) {
    %c0_i32 = arith.constant 0 : i32
    %c0_i32_0 = arith.constant 0 : i32
    %c0_i32_1 = arith.constant 0 : i32
    return %c0_i32, %c0_i32_0 : i32, i32
  }
  func.func @transform_24(%arg0: i32) -> (i32, i32) {
    %c0_i32 = arith.constant 0 : i32
    %c0_i32_0 = arith.constant 0 : i32
    %c0_i32_1 = arith.constant 0 : i32
    return %c0_i32, %c0_i32_0 : i32, i32
  }
  func.func @transform_25(%arg0: i32) -> (i32, i32) {
    %c0_i32 = arith.constant 0 : i32
    %c0_i32_0 = arith.constant 0 : i32
    %c0_i32_1 = arith.constant 0 : i32
    return %c0_i32, %c0_i32_0 : i32, i32
  }
  func.func @transform_26(%arg0: i32) -> (i32, i32) {
    %c0_i32 = arith.constant 0 : i32
    %c0_i32_0 = arith.constant 0 : i32
    %c0_i32_1 = arith.constant 0 : i32
    return %c0_i32, %c0_i32_0 : i32, i32
  }
  func.func @transform_27(%arg0: i32) -> (i32, i32) {
    %c0_i32 = arith.constant 0 : i32
    %c0_i32_0 = arith.constant 0 : i32
    %c0_i32_1 = arith.constant 0 : i32
    return %c0_i32, %c0_i32_0 : i32, i32
  }
  func.func @transform_28(%arg0: i32) -> (i32, i32) {
    %c0_i32 = arith.constant 0 : i32
    %c0_i32_0 = arith.constant 0 : i32
    %c0_i32_1 = arith.constant 0 : i32
    return %c0_i32, %c0_i32_0 : i32, i32
  }
  func.func @transform_29(%arg0: i32) -> (i32, i32) {
    %c0_i32 = arith.constant 0 : i32
    %c0_i32_0 = arith.constant 0 : i32
    %c0_i32_1 = arith.constant 0 : i32
    return %c0_i32, %c0_i32_0 : i32, i32
  }
  func.func @transform_30(%arg0: i32) -> (i32, i32) {
    %c0_i32 = arith.constant 0 : i32
    %c0_i32_0 = arith.constant 0 : i32
    %c0_i32_1 = arith.constant 0 : i32
    return %c0_i32, %c0_i32_0 : i32, i32
  }
  func.func @transform_31(%arg0: i32) -> (i32, i32) {
    %c0_i32 = arith.constant 0 : i32
    %c0_i32_0 = arith.constant 0 : i32
    %c0_i32_1 = arith.constant 0 : i32
    return %c0_i32, %c0_i32_0 : i32, i32
  }
  func.func @transform_32(%arg0: i32) -> (i32, i32) {
    %c0_i32 = arith.constant 0 : i32
    %c0_i32_0 = arith.constant 0 : i32
    %c0_i32_1 = arith.constant 0 : i32
    return %c0_i32, %c0_i32_0 : i32, i32
  }
  func.func @transform_33(%arg0: i32) -> (i32, i32) {
    %c0_i32 = arith.constant 0 : i32
    %c0_i32_0 = arith.constant 0 : i32
    %c0_i32_1 = arith.constant 0 : i32
    return %c0_i32, %c0_i32_0 : i32, i32
  }
  func.func @transform_34(%arg0: i32) -> (i32, i32) {
    %c0_i32 = arith.constant 0 : i32
    %c0_i32_0 = arith.constant 0 : i32
    %c0_i32_1 = arith.constant 0 : i32
    return %c0_i32, %c0_i32_0 : i32, i32
  }
  func.func @transform_35(%arg0: i32) -> (i32, i32) {
    %c0_i32 = arith.constant 0 : i32
    %c0_i32_0 = arith.constant 0 : i32
    %c0_i32_1 = arith.constant 0 : i32
    return %c0_i32, %c0_i32_0 : i32, i32
  }
  func.func @transform_36(%arg0: i32) -> (i32, i32) {
    %c0_i32 = arith.constant 0 : i32
    %c0_i32_0 = arith.constant 0 : i32
    %c0_i32_1 = arith.constant 0 : i32
    return %c0_i32, %c0_i32_0 : i32, i32
  }
  func.func @transform_37(%arg0: i32) -> (i32, i32) {
    %c0_i32 = arith.constant 0 : i32
    %c0_i32_0 = arith.constant 0 : i32
    %c0_i32_1 = arith.constant 0 : i32
    return %c0_i32, %c0_i32_0 : i32, i32
  }
  func.func @transform_38(%arg0: i32) -> (i32, i32) {
    %c0_i32 = arith.constant 0 : i32
    %c0_i32_0 = arith.constant 0 : i32
    %c0_i32_1 = arith.constant 0 : i32
    return %c0_i32, %c0_i32_0 : i32, i32
  }
  func.func @transform_39(%arg0: i32) -> (i32, i32) {
    %c0_i32 = arith.constant 0 : i32
    %c0_i32_0 = arith.constant 0 : i32
    %c0_i32_1 = arith.constant 0 : i32
    return %c0_i32, %c0_i32_0 : i32, i32
  }
  func.func @transform_40(%arg0: i32) -> (i32, i32) {
    %c0_i32 = arith.constant 0 : i32
    %c0_i32_0 = arith.constant 0 : i32
    %c0_i32_1 = arith.constant 0 : i32
    return %c0_i32, %c0_i32_0 : i32, i32
  }
  func.func @transform_41(%arg0: i32) -> (i32, i32) {
    %c0_i32 = arith.constant 0 : i32
    %c0_i32_0 = arith.constant 0 : i32
    %c0_i32_1 = arith.constant 0 : i32
    return %c0_i32, %c0_i32_0 : i32, i32
  }
  func.func @transform_42(%arg0: i32) -> (i32, i32) {
    %c0_i32 = arith.constant 0 : i32
    %c0_i32_0 = arith.constant 0 : i32
    %c0_i32_1 = arith.constant 0 : i32
    return %c0_i32, %c0_i32_0 : i32, i32
  }
  func.func @transform_43(%arg0: i32) -> (i32, i32) {
    %c0_i32 = arith.constant 0 : i32
    %c0_i32_0 = arith.constant 0 : i32
    %c0_i32_1 = arith.constant 0 : i32
    return %c0_i32, %c0_i32_0 : i32, i32
  }
  func.func @transform_44(%arg0: i32) -> (i32, i32) {
    %c0_i32 = arith.constant 0 : i32
    %c0_i32_0 = arith.constant 0 : i32
    %c0_i32_1 = arith.constant 0 : i32
    return %c0_i32, %c0_i32_0 : i32, i32
  }
  func.func @transform_45(%arg0: i32) -> (i32, i32) {
    %c0_i32 = arith.constant 0 : i32
    %c0_i32_0 = arith.constant 0 : i32
    %c0_i32_1 = arith.constant 0 : i32
    return %c0_i32, %c0_i32_0 : i32, i32
  }
  func.func @transform_46(%arg0: i32) -> (i32, i32) {
    %c0_i32 = arith.constant 0 : i32
    %c0_i32_0 = arith.constant 0 : i32
    %c0_i32_1 = arith.constant 0 : i32
    return %c0_i32, %c0_i32_0 : i32, i32
  }
}

</mosaic_0001>

<bundles_post_ra>
// kernel: agcn_forward.1
= control target key start
LH: loop header
LB: loop body
LE: loop exit
PB: predicated region body
PF: predicated region fallthrough
CT: control target
= control target key end

     0   :  { %s2684_s6 = smov 1   ;;  %s2685_s10 = smov 2   ;;  %s3364_s0 = inlined_call_operand.smem [shape: u32[47], index: -1, kind: input, shape index: {}] }
   0x1   :  { %s2747_s5 = sld [smem:[%s3364_s0]]   ;;  %s2686_s14 = smov 3  }
   0x2   :  { %s2752_s9 = sld [smem:[%s3364_s0 + %s2684_s6]]   ;;  %s2687_s18 = smov 4  }
   0x3   :  { %s2757_s13 = sld [smem:[%s3364_s0 + %s2685_s10]]   ;;  %s2688_s22 = smov 5  }
   0x4   :  { %s2762_s17 = sld [smem:[%s3364_s0 + %s2686_s14]]   ;;  %s2689_s26 = smov 6  }
   0x5   :  { %s2767_s21 = sld [smem:[%s3364_s0 + %s2687_s18]]   ;;  %s2690_s30 = smov 7  }
   0x6   :  { %s2772_s25 = sld [smem:[%s3364_s0 + %s2688_s22]]   ;;  %s2691_s4 = smov 8  }
   0x7   :  { %s2777_s29 = sld [smem:[%s3364_s0 + %s2689_s26]]   ;;  %s2692_s10 = smov 9  }
   0x8   :  { %3382 = sst [smem:[#allocation8_spill]] %s2752_s9  ;;  %s2693_s15 = smov 10  }
   0x9   :  { %s2782_s3 = sld [smem:[%s3364_s0 + %s2690_s30]]   ;;  %s2694_s20 = smov 11  }
   0xa   :  { %s2787_s8 = sld [smem:[%s3364_s0 + %s2691_s4]]   ;;  %s2695_s26 = smov 12  }
   0xb   :  { %s2792_s14 = sld [smem:[%s3364_s0 + %s2692_s10]]   ;;  %s2696_s1 = smov 13  }
   0xc   :  { %s2797_s19 = sld [smem:[%s3364_s0 + %s2693_s15]]   ;;  %s2697_s7 = smov 14  }
   0xd   :  { %s2802_s24 = sld [smem:[%s3364_s0 + %s2694_s20]]   ;;  %s2698_s15 = smov 15  }
   0xe   :  { %s2807_s30 = sld [smem:[%s3364_s0 + %s2695_s26]]   ;;  %s2699_s22 = smov 16  }
   0xf   :  { %s2812_s6 = sld [smem:[%s3364_s0 + %s2696_s1]]   ;;  %s2700_s28 = smov 17  }
  0x10   :  { %s2817_s12 = sld [smem:[%s3364_s0 + %s2697_s7]]   ;;  %s2701_s7 = smov 18  }
  0x11   :  { %s2822_s20 = sld [smem:[%s3364_s0 + %s2698_s15]]   ;;  %s2702_s15 = smov 19  }
  0x12   :  { %s2827_s27 = sld [smem:[%s3364_s0 + %s2699_s22]]   ;;  %s2703_s22 = smov 20  }
  0x13   :  { %s2832_s4 = sld [smem:[%s3364_s0 + %s2700_s28]]   ;;  %s2704_s28 = smov 21  }
  0x14   :  { %s2837_s9 = sld [smem:[%s3364_s0 + %s2701_s7]]   ;;  %s2705_s7 = smov 22  }
  0x17   :  { %3383 = sst [smem:[#allocation9_spill]] %s2822_s20 }
  0x18   :  { %3384 = sst [smem:[#allocation10_spill]] %s2827_s27 }
  0x19   :  { %3385 = sst [smem:[#allocation11_spill]] %s2832_s4 }
  0x1a   :  { %3386 = sst [smem:[#allocation12_spill]] %s2837_s9 }
  0x1b   :  { %s2842_s20 = sld [smem:[%s3364_s0 + %s2702_s15]]   ;;  %s2706_s15 = smov 23  }
  0x1c   :  { %s2847_s27 = sld [smem:[%s3364_s0 + %s2703_s22]]   ;;  %s2707_s22 = smov 24  }
  0x1d   :  { %s2852_s4 = sld [smem:[%s3364_s0 + %s2704_s28]]   ;;  %s2708_s28 = smov 25  }
  0x1e   :  { %s2857_s9 = sld [smem:[%s3364_s0 + %s2705_s7]]   ;;  %s2709_s7 = smov 26  }
  0x21   :  { %3387 = sst [smem:[#allocation13_spill]] %s2842_s20 }
  0x22   :  { %3388 = sst [smem:[#allocation14_spill]] %s2847_s27 }
  0x23   :  { %3389 = sst [smem:[#allocation15_spill]] %s2852_s4 }
  0x24   :  { %3390 = sst [smem:[#allocation16_spill]] %s2857_s9 }
  0x25   :  { %s2862_s20 = sld [smem:[%s3364_s0 + %s2706_s15]]   ;;  %s2710_s15 = smov 27  }
  0x26   :  { %s2867_s27 = sld [smem:[%s3364_s0 + %s2707_s22]]   ;;  %s2711_s22 = smov 28  }
  0x27   :  { %s2872_s4 = sld [smem:[%s3364_s0 + %s2708_s28]]   ;;  %s2712_s28 = smov 29  }
  0x28   :  { %s2877_s9 = sld [smem:[%s3364_s0 + %s2709_s7]]   ;;  %s2713_s7 = smov 30  }
  0x2b   :  { %3391 = sst [smem:[#allocation17_spill]] %s2862_s20 }
  0x2c   :  { %3392 = sst [smem:[#allocation18_spill]] %s2867_s27 }
  0x2d   :  { %3393 = sst [smem:[#allocation19_spill]] %s2872_s4 }
  0x2e   :  { %3394 = sst [smem:[#allocation20_spill]] %s2877_s9 }
  0x2f   :  { %s2882_s20 = sld [smem:[%s3364_s0 + %s2710_s15]]   ;;  %s2714_s15 = smov 31  }
  0x30   :  { %s2887_s27 = sld [smem:[%s3364_s0 + %s2711_s22]]   ;;  %s2715_s22 = smov 32  }
  0x31   :  { %s2892_s4 = sld [smem:[%s3364_s0 + %s2712_s28]]   ;;  %s2716_s28 = smov 33  }
  0x32   :  { %s2897_s9 = sld [smem:[%s3364_s0 + %s2713_s7]]   ;;  %s2717_s7 = smov 34  }
  0x35   :  { %3395 = sst [smem:[#allocation21_spill]] %s2882_s20 }
  0x36   :  { %3396 = sst [smem:[#allocation22_spill]] %s2887_s27 }
  0x37   :  { %3397 = sst [smem:[#allocation23_spill]] %s2892_s4 }
  0x38   :  { %3398 = sst [smem:[#allocation24_spill]] %s2897_s9 }
  0x39   :  { %s2902_s20 = sld [smem:[%s3364_s0 + %s2714_s15]]   ;;  %s2718_s15 = smov 35  }
  0x3a   :  { %s2907_s27 = sld [smem:[%s3364_s0 + %s2715_s22]]   ;;  %s2719_s22 = smov 36  }
  0x3b   :  { %s2912_s4 = sld [smem:[%s3364_s0 + %s2716_s28]]   ;;  %s2720_s28 = smov 37  }
  0x3c   :  { %s2917_s9 = sld [smem:[%s3364_s0 + %s2717_s7]]   ;;  %s2721_s7 = smov 38  }
  0x3f   :  { %3399 = sst [smem:[#allocation25_spill]] %s2902_s20 }
  0x40   :  { %3400 = sst [smem:[#allocation26_spill]] %s2907_s27 }
  0x41   :  { %3401 = sst [smem:[#allocation27_spill]] %s2912_s4 }
  0x42   :  { %3402 = sst [smem:[#allocation28_spill]] %s2917_s9 }
  0x43   :  { %s2922_s20 = sld [smem:[%s3364_s0 + %s2718_s15]]   ;;  %s2722_s15 = smov 39  }
  0x44   :  { %s2927_s27 = sld [smem:[%s3364_s0 + %s2719_s22]]   ;;  %s2723_s22 = smov 40  }
  0x45   :  { %s2932_s4 = sld [smem:[%s3364_s0 + %s2720_s28]]   ;;  %s2724_s28 = smov 41  }
  0x46   :  { %s2937_s9 = sld [smem:[%s3364_s0 + %s2721_s7]]   ;;  %s2725_s7 = smov 42  }
  0x49   :  { %3403 = sst [smem:[#allocation29_spill]] %s2922_s20 }
  0x4a   :  { %3404 = sst [smem:[#allocation30_spill]] %s2927_s27 }
  0x4b   :  { %3405 = sst [smem:[#allocation31_spill]] %s2932_s4 }
  0x4c   :  { %3406 = sst [smem:[#allocation32_spill]] %s2937_s9 }
  0x4d   :  { %s2942_s20 = sld [smem:[%s3364_s0 + %s2722_s15]]   ;;  %s2726_s15 = smov 43  }
  0x4e   :  { %s2947_s27 = sld [smem:[%s3364_s0 + %s2723_s22]]   ;;  %s2727_s22 = smov 44  }
  0x4f   :  { %s2952_s4 = sld [smem:[%s3364_s0 + %s2724_s28]]   ;;  %s2728_s28 = smov 45  }
  0x50   :  { %s2957_s9 = sld [smem:[%s3364_s0 + %s2725_s7]]   ;;  %s2729_s7 = smov 46  }
  0x53   :  { %3407 = sst [smem:[#allocation33_spill]] %s2942_s20 }
  0x54   :  { %3408 = sst [smem:[#allocation34_spill]] %s2947_s27 }
  0x55   :  { %3409 = sst [smem:[#allocation35_spill]] %s2952_s4 }
  0x56   :  { %3410 = sst [smem:[#allocation36_spill]] %s2957_s9 }
  0x57   :  { %s2962_s20 = sld [smem:[%s3364_s0 + %s2726_s15]]  }
  0x58   :  { %s2967_s27 = sld [smem:[%s3364_s0 + %s2727_s22]]  }
  0x59   :  { %s2972_s4 = sld [smem:[%s3364_s0 + %s2728_s28]]  }
  0x5a   :  { %s2977_s9 = sld [smem:[%s3364_s0 + %s2729_s7]]  }
  0x5b   :  { %99 = vsyncpa [#allocation3], 0  ;;  %v191_v0 = vld [vmem:[%s2757_s13] sm:$0xff]  ;;  %v192_v1 = vld [vmem:[%s2757_s13 + $0x8] sm:$0xff]  ;;  %v2730_v3 = vmov 0.0   ;;  %vm2731_vm0 = vmmov 0  }
  0x5c   :  { %v188_v2 = vld [vmem:[%s2747_s5] sm:$0xff]  ;;  %2305 = vmatprep.subr.bf16.mxu0 %v2730_v3  ;;  %v194_v4 = vpack.c.bf16 %v192_v1, %v191_v0  ;;  %2307 = vmatprep.mubr.msk.bf16.mxu0 %vm2731_vm0, %v2730_v3 }
  0x5d   :  { %100 = vsyncpa [#allocation5], 0  ;;  %v2985_v5 = vpack.c.bf16 %v188_v2, %v188_v2  ;;  %2311 = vmatprep.subr.bf16.mxu1 %v2730_v3  ;;  %2315 = vmatprep.mubr.msk.bf16.mxu1 %vm2731_vm0, %v2730_v3  ;;  %vm202_vm1 = vcmask 130048   ;;  %v249_v6 = vld [vmem:[%s2767_s21 + $0x10] sm:$0xff]  ;;  %v250_v7 = vld [vmem:[%s2767_s21 + $0x18] sm:$0xff]  ;;  %vm261_vm2 = vcmask 261120  }
  0x5e   :  { %2306 = vmatpush3.bf16.msra.mxu0 %v194_v4  ;;  %v253_v8 = vpack.c.bf16 %v250_v7, %v249_v6  ;;  %v247_v9 = vld [vmem:[%s2767_s21] sm:$0xff]  ;;  %v248_v10 = vld [vmem:[%s2767_s21 + $0x8] sm:$0xff]  ;;  %v308_v20 = vld [vmem:[%s2777_s29 + $0x10] sm:$0xff]  ;;  %vm432_vm3 = vcmask 1043456   ;;  %vm428_vm4 = vcmask 64512   ;;  %s3411_s0 = sld [smem:[#allocation12_spill]] }
  0x5f   :  { %2319 = vmatprep.subr.bf16.mxu0 %v2730_v3  ;;  %v252_v11 = vpack.c.bf16 %v248_v10, %v247_v9  ;;  %v2177_v12 = vld [vmem:[%s2762_s17] ss:$0 sm:$0xff]  ;;  %v309_v21 = vld [vmem:[%s2777_s29 + $0x18] sm:$0xff]  ;;  %v307_v24 = vld [vmem:[%s2777_s29 + $0x8] sm:$0xff]  ;;  %s3412_s5 = sld [smem:[#allocation10_spill]]  ;;  %vm844_vm5 = vcmask 15360  }
  0x60   :  { %2312 = vmatpush3.bf16.msra.mxu1 %v253_v8  ;;  %v312_v22 = vpack.c.bf16 %v309_v21, %v308_v20  ;;  %v306_v23 = vld [vmem:[%s2777_s29] sm:$0xff]  ;;  %v365_v35 = vld [vmem:[%s2787_s8 + $0x8] sm:$0xff]  ;;  %v534_v2 = vld [vmem:[%s2817_s12 + $0x10] sm:$0xff]  ;;  %s3413_s13 = sld [smem:[#allocation9_spill]]  ;;  %vm1686_vm12 = vcmask 39936   ;;  %vm2011_vm15 = vcmask 31744  }
  0x61   :  { %2308 = vmatmul.mubr.msk.bf16.vlgmr.msra.gmra.mxu0 %vm202_vm1, %v2985_v5  ;;  %2313 = vmatprep.subr.bf16.mxu1 %v2730_v3  ;;  %v311_v25 = vpack.c.bf16 %v307_v24, %v306_v23  ;;  %v2179_v26 = vld [vmem:[%s2772_s25] ss:$0 sm:$0xff]  ;;  %v478_v56 = vld [vmem:[%s2807_s30 + $0x8] sm:$0xff]  ;;  %v535_v4 = vld [vmem:[%s2817_s12 + $0x18] sm:$0xff]  ;;  %s3414_s17 = sld [smem:[#allocation8_spill]] }
  0x62   :  { %2323 = vmatprep.mubr.msk.bf16.mxu0 %vm2731_vm0, %v2730_v3  ;;  %2320 = vmatpush3.bf16.msra.mxu0 %v312_v22  ;;  %v364_v34 = vld [vmem:[%s2787_s8] sm:$0xff]  ;;  %v538_v6 = vpack.c.bf16 %v535_v4, %v534_v2  ;;  %v533_v8 = vld [vmem:[%s2817_s12 + $0x8] sm:$0xff]  ;;  %s3415_s21 = sld [smem:[#allocation21_spill]] }
  0x63   :  { %2321 = vmatprep.subr.bf16.mxu0 %v2730_v3  ;;  %v367_v36 = vpack.c.bf16 %v365_v35, %v364_v34  ;;  %v2181_v37 = vld [vmem:[%s2782_s3] ss:$0 sm:$0xff]  ;;  %s3416_s25 = sld [smem:[#allocation22_spill]] }
  0x64   :  { %2314 = vmatpush3.bf16.msra.mxu1 %v252_v11  ;;  %v418_v45 = vld [vmem:[%s2797_s19] sm:$0xff]  ;;  %s3417_s29 = sld [smem:[#allocation11_spill]] }
  0x65   :  { %2327 = vmatprep.subr.bf16.mxu1 %v2730_v3  ;;  %v420_v46 = vpack.c.bf16 %v418_v45, %v418_v45  ;;  %v2183_v48 = vld [vmem:[%s2792_s14] ss:$0 sm:$0xff]  ;;  %v592_v23 = vld [vmem:[%s3412_s5 + $0x10] sm:$0xff]  ;;  %v593_v24 = vld [vmem:[%s3412_s5 + $0x18] sm:$0xff]  ;;  %s3418_s3 = sld [smem:[#allocation23_spill]] }
  0x66   :  { %2322 = vmatpush3.bf16.msra.mxu0 %v311_v25  ;;  %v477_v55 = vld [vmem:[%s2807_s30] sm:$0xff]  ;;  %v596_v25 = vpack.c.bf16 %v593_v24, %v592_v23  ;;  %s3419_s8 = sld [smem:[#allocation13_spill]] }
  0x67   :  { %2333 = vmatprep.subr.bf16.mxu0 %v2730_v3  ;;  %v434_v47 = vsel %vm432_vm3, %v420_v46, 0  ;;  %v480_v57 = vpack.c.bf16 %v478_v56, %v477_v55  ;;  %v2185_v58 = vld [vmem:[%s2802_s24] ss:$0 sm:$0xff]  ;;  %s3420_s14 = sld [smem:[#allocation25_spill]] }
  0x68   :  { %v532_v7 = vld [vmem:[%s2817_s12] sm:$0xff]  ;;  %s3421_s19 = sld [smem:[#allocation24_spill]] }
  0x69   :  { %v537_v9 = vpack.c.bf16 %v533_v8, %v532_v7  ;;  %v2187_v10 = vld [vmem:[%s2812_s6] ss:$0 sm:$0xff]  ;;  %v746_v56 = vld [vmem:[%s3416_s25 + $0x10] sm:$0xff]  ;;  %s3422_s24 = sld [smem:[#allocation26_spill]] }
  0x6a   :  { %s3423_s30 = sld [smem:[#allocation14_spill]] }
  0x6b   :  { %s3424_s6 = sld [smem:[#allocation27_spill]] }
  0x6c   :  { %s3425_s12 = sld [smem:[#allocation28_spill]] }
  0x6d   :  { %s3426_s15 = sld [smem:[#allocation29_spill]] }
  0x6e   :  { %s3427_s16 = sld [smem:[#allocation15_spill]] }
  0x6f   :  { %s3428_s18 = sld [smem:[#allocation31_spill]] }
  0x70   :  { %s3429_s22 = sld [smem:[#allocation32_spill]] }
  0x71   :  { %s3430_s23 = sld [smem:[#allocation34_spill]] }
  0x72   :  { %s3431_s26 = sld [smem:[#allocation17_spill]] }
  0x73   :  { %s3432_s28 = sld [smem:[#allocation30_spill]] }
  0x74   :  { %s3433_s1 = sld [smem:[#allocation33_spill]] }
  0x75   :  { %s3434_s2 = sld [smem:[#allocation19_spill]] }
  0x76   :  { %s3435_s7 = sld [smem:[#allocation16_spill]] }
  0x77   :  { %s3436_s10 = sld [smem:[#allocation18_spill]] }
  0x78   :  { %s3437_s11 = sld [smem:[#allocation20_spill]] }
 0x121   :  { %v240_v13 = vpop.f32.mrf.mxu0 }
 0x122   :  { %v241_v14 = vadd.f32 %v2177_v12, %v240_v13  ;;  %v647_v13 = vld [vmem:[%s3411_s0] sm:$0xff] }
 0x123   :  { %v2309_v15 = vpop.f32.mrf.mxu0 }
 0x124   :  { %v3002_v16 = vmax.f32 %v241_v14, 0.0  ;;  %v648_v14 = vld [vmem:[%s3411_s0 + $0x8] sm:$0xff]  ;;  %s3438_s0 = sld [smem:[#allocation36_spill]] }
 0x125   :  { %v243_v17 = vpop.f32.mrf.mxu0  ;;  %v649_v20 = vpack.c.bf16 %v648_v14, %v647_v13 }
 0x126   :  { %v3006_v18 = vpack.c.bf16 %v3002_v16, %v3002_v16 }
 0x127   :  { %v2310_v19 = vpop.f32.mrf.mxu0 }
 0x128   :  { %2316 = vmatmul.mubr.msk.bf16.vlgmr.msra.gmra.mxu1 %vm261_vm2, %v3006_v18 }
 0x129   :  { %2329 = vmatprep.mubr.msk.bf16.mxu1 %vm2731_vm0, %v2730_v3  ;;  %2328 = vmatpush3.bf16.msra.mxu1 %v367_v36 }
 0x12a   :  { %2339 = vmatprep.subr.bf16.mxu1 %v2730_v3 }
 0x1e8   :  { %v299_v27 = vpop.f32.mrf.mxu1 }
 0x1e9   :  { %v300_v28 = vadd.f32 %v2179_v26, %v299_v27  ;;  %v590_v26 = vld [vmem:[%s3412_s5] sm:$0xff]  ;;  %v591_v27 = vld [vmem:[%s3412_s5 + $0x8] sm:$0xff]  ;;  %s3439_s5 = sld [smem:[#allocation35_spill]] }
 0x1ea   :  { %v2317_v29 = vpop.f32.mrf.mxu1 }
 0x1eb   :  { %v3019_v30 = vmax.f32 %v300_v28, 0.0  ;;  %v595_v28 = vpack.c.bf16 %v591_v27, %v590_v26  ;;  %v2189_v29 = vld [vmem:[%s3413_s13] ss:$0 sm:$0xff]  ;;  %s2737_s13 = smov [#allocation2]  }
 0x1ec   :  { %v302_v31 = vpop.f32.mrf.mxu1 }
 0x1ed   :  { %v3023_v32 = vpack.c.bf16 %v3019_v30, %v3019_v30 }
 0x1ee   :  { %v2318_v33 = vpop.f32.mrf.mxu1 }
 0x1ef   :  { %2324 = vmatmul.mubr.msk.bf16.vlgmr.msra.gmra.mxu0 %vm261_vm2, %v3023_v32 }
 0x1f0   :  { %2335 = vmatprep.mubr.msk.bf16.mxu0 %vm2731_vm0, %v2730_v3  ;;  %2334 = vmatpush3.bf16.msra.mxu0 %v434_v47 }
 0x1f1   :  { %2345 = vmatprep.subr.bf16.mxu0 %v2730_v3 }
 0x2af   :  { %v357_v38 = vpop.f32.mrf.mxu0 }
 0x2b0   :  { %v358_v39 = vadd.f32 %v2181_v37, %v357_v38 }
 0x2b1   :  { %v2325_v40 = vpop.f32.mrf.mxu0 }
 0x2b2   :  { %v3033_v41 = vmax.f32 %v358_v39, 0.0  ;;  %v189_v39 = vld [vmem:[%s3414_s17] sm:$0xff]  ;;  %s2101_s17 = sshll.u32 %s2737_s13, 4  ;;  %s2102_s17 = int_to_ptr.vmem [resolvable:$true] %s2101_s17 }
 0x2b3   :  { %v360_v42 = vpop.f32.mrf.mxu0  ;;  %v3097_v47 = vpack.c.bf16 %v189_v39, %v189_v39  ;;  %v2733_v39 = vmov 0   ;;  %p2645_p1 = scmp.lt.s32.totalorder %s2102_s17, %s2102_s17 }
 0x2b4   :  { %v3037_v43 = vpack.c.bf16 %v3033_v41, %v3033_v41  ;;  %v740_v42 = vld [vmem:[%s3415_s21 + $0x10] sm:$0xff]  ;;  %2592 = vset.pattern.permute.xlu1 %v2733_v39 }
 0x2b5   :  { %v2326_v44 = vpop.f32.mrf.mxu0 }
 0x2b6   :  { %2330 = vmatmul.mubr.msk.bf16.vlgmr.msra.gmra.mxu1 %vm202_vm1, %v3037_v43  ;;  %v741_v44 = vld [vmem:[%s3415_s21 + $0x18] sm:$0xff] }
 0x2b7   :  { %2341 = vmatprep.mubr.msk.bf16.mxu1 %vm2731_vm0, %v2730_v3  ;;  %2340 = vmatpush3.bf16.msra.mxu1 %v480_v57  ;;  %v747_v57 = vld [vmem:[%s3416_s25 + $0x18] sm:$0xff] }
 0x2b8   :  { %2353 = vmatprep.subr.bf16.mxu1 %v2730_v3 }
 0x376   :  { %v412_v49 = vpop.f32.mrf.mxu1 }
 0x377   :  { %v3047_v50 = vadd.f32 %v2183_v48, %v412_v49  ;;  %v743_v49 = vpack.c.bf16 %v741_v44, %v740_v42  ;;  %v885_v42 = vld [vmem:[%s3419_s8 + $0x18] sm:$0xff] }
 0x378   :  { %v2331_v51 = vpop.f32.mrf.mxu1 }
 0x379   :  { %v3051_v52 = vpack.c.bf16 %v3047_v50, %v3047_v50  ;;  %2094 = vst.msk [vmem:[#allocation4] sm:$0xff] %vm428_vm4, %v3047_v50  ;;  %v738_v51 = vld [vmem:[%s3415_s21] sm:$0xff] }
 0x37a   :  { %v415_v53 = vpop.f32.mrf.mxu1 }
 0x37b   :  { %2336 = vmatmul.mubr.msk.bf16.vlgmr.msra.gmra.mxu0 %vm428_vm4, %v3051_v52  ;;  %v739_v53 = vld [vmem:[%s3415_s21 + $0x8] sm:$0xff]  ;;  %s2738_s21 = smov [#allocation4]  }
 0x37c   :  { %v2332_v54 = vpop.f32.mrf.mxu1  ;;  %2349 = vmatprep.mubr.msk.bf16.mxu0 %vm2731_vm0, %v2730_v3  ;;  %2346 = vmatpush3.bf16.msra.mxu0 %v538_v6  ;;  %v742_v55 = vpack.c.bf16 %v739_v53, %v738_v51 }
 0x37d   :  { %2347 = vmatprep.subr.bf16.mxu0 %v2730_v3 }
 0x380   :  { %2348 = vmatpush3.bf16.msra.mxu0 %v537_v9 }
 0x381   :  { %2361 = vmatprep.subr.bf16.mxu0 %v2730_v3 }
 0x43b   :  { %v470_v59 = vpop.f32.mrf.mxu0 }
 0x43c   :  { %v471_v60 = vadd.f32 %v2185_v58, %v470_v59  ;;  %v750_v58 = vpack.c.bf16 %v747_v57, %v746_v56  ;;  %v744_v59 = vld [vmem:[%s3416_s25] sm:$0xff]  ;;  %v883_v56 = vld [vmem:[%s3419_s8 + $0x8] sm:$0xff] }
 0x43d   :  { %v2337_v61 = vpop.f32.mrf.mxu0 }
 0x43e   :  { %v476_v62 = vmax.f32 %v471_v60, 0.0  ;;  %v745_v60 = vld [vmem:[%s3416_s25 + $0x8] sm:$0xff]  ;;  %s2115_s25 = sshll.u32 %s2738_s21, 4  ;;  %s2116_s25 = int_to_ptr.vmem [resolvable:$true] %s2115_s25 }
 0x43f   :  { %v473_v63 = vpop.f32.mrf.mxu0  ;;  %v749_v61 = vpack.c.bf16 %v745_v60, %v744_v59 }
 0x440   :  { %v479_v0 = vpack.c.bf16 %v476_v62, %v476_v62  ;;  %v2191_v62 = vld [vmem:[%s3417_s29] ss:$0 sm:$0xff]  ;;  %s2640_s29 = scalar_lea.vmem %s2102_s17, 128 }
 0x441   :  { %v2338_v1 = vpop.f32.mrf.mxu0  ;;  %p2641_p0 = scmp.ne.s32.totalorder %s2102_s17, %s2640_s29  ;;  %p2646_p2 = scmp.lt.s32.totalorder %s2640_s29, %s2640_s29 }
 0x442   :  { %2342 = vmatmul.mubr.msk.bf16.vlgmr.msra.gmra.mxu1 %vm202_vm1, %v479_v0 }
 0x443   :  { %2357 = vmatprep.mubr.msk.bf16.mxu1 %vm2731_vm0, %v2730_v3  ;;  %2354 = vmatpush3.bf16.msra.mxu1 %v596_v25  ;;  %p2647_p3 = por %p2646_p2, %p2645_p1 }
 0x444   :  { %2355 = vmatprep.subr.bf16.mxu1 %v2730_v3 }
 0x445   :  { %p2648_p4 = pnand %p2647_p3, %p2641_p0 }
 0x447   :  { %2356 = vmatpush3.bf16.msra.mxu1 %v595_v28 }
 0x448   :  { %2367 = vmatprep.subr.bf16.mxu1 %v2730_v3 }
 0x502   :  { %v525_v11 = vpop.f32.mrf.mxu1 }
 0x503   :  { %v526_v12 = vadd.f32 %v2187_v10, %v525_v11 }
 0x504   :  { %v2343_v15 = vpop.f32.mrf.mxu1 }
 0x505   :  { %v531_v17 = vmax.f32 %v526_v12, 0.0 }
 0x506   :  { %v528_v19 = vpop.f32.mrf.mxu1 }
 0x507   :  { %v536_v21 = vpack.c.bf16 %v531_v17, %v531_v17  ;;  %v2197_v17 = vld [vmem:[%s3418_s3] ss:$0 sm:$0xff] }
 0x508   :  { %v2344_v22 = vpop.f32.mrf.mxu1 }
 0x509   :  { %2350 = vmatmul.mubr.msk.bf16.vlgmr.msra.gmra.mxu0 %vm261_vm2, %v536_v21 }
 0x50a   :  { %2362 = vmatpush3.bf16.msra.mxu0 %v649_v20  ;;  %2363 = vmatprep.mubr.msk.bf16.mxu0 %vm2731_vm0, %v2730_v3 }
 0x50b   :  { %2373 = vmatprep.subr.bf16.mxu0 %v2730_v3 }
 0x511   :  { %2364 = vmatmul.mubr.msk.bf16.vlgmr.msra.gmra.mxu0 %vm202_vm1, %v2985_v5 }
 0x512   :  { %2377 = vmatprep.mubr.msk.bf16.mxu0 %vm2731_vm0, %v2730_v3  ;;  %2374 = vmatpush3.bf16.msra.mxu0 %v750_v58 }
 0x513   :  { %2375 = vmatprep.subr.bf16.mxu0 %v2730_v3 }
 0x516   :  { %2376 = vmatpush3.bf16.msra.mxu0 %v749_v61 }
 0x517   :  { %2389 = vmatprep.subr.bf16.mxu0 %v2730_v3 }
 0x5c9   :  { %v583_v5 = vpop.f32.mrf.mxu0 }
 0x5ca   :  { %v584_v31 = vadd.f32 %v2189_v29, %v583_v5 }
 0x5cb   :  { %v2351_v33 = vpop.f32.mrf.mxu0 }
 0x5cc   :  { %v589_v34 = vmax.f32 %v584_v31, 0.0 }
 0x5cd   :  { %v586_v35 = vpop.f32.mrf.mxu0 }
 0x5ce   :  { %v594_v36 = vpack.c.bf16 %v589_v34, %v589_v34 }
 0x5cf   :  { %v2352_v37 = vpop.f32.mrf.mxu0 }
 0x5d0   :  { %2358 = vmatmul.mubr.msk.bf16.vlgmr.msra.gmra.mxu1 %vm261_vm2, %v594_v36 }
 0x5d1   :  { %v684_v38 = vpop.f32.mrf.mxu0  ;;  %2369 = vmatprep.mubr.msk.bf16.mxu1 %vm2731_vm0, %v2730_v3 }
 0x5d2   :  { %v690_v40 = vpack.c.bf16 %v684_v38, %v684_v38  ;;  %v2732_v38 = vmov 1  }
 0x5d3   :  { %v2365_v45 = vpop.f32.mrf.mxu0  ;;  %2593 = vset.pattern.permute.xlu0 %v2732_v38 }
 0x5d4   :  { %v695_v46 = vsel %vm432_vm3, %v690_v40, 0  ;;  %v884_v40 = vld [vmem:[%s3419_s8 + $0x10] sm:$0xff] }
 0x5d5   :  { %v687_v48 = vpop.f32.mrf.mxu0  ;;  %2368 = vmatpush3.bf16.msra.mxu1 %v695_v46  ;;  %v888_v44 = vpack.c.bf16 %v885_v42, %v884_v40 }
 0x5d6   :  { %2381 = vmatprep.subr.bf16.mxu1 %v2730_v3 }
 0x5d7   :  { %v2366_v54 = vpop.f32.mrf.mxu0 }
 0x5d8   :  { %2370 = vmatmul.mubr.msk.bf16.vlgmr.msra.gmra.mxu1 %vm428_vm4, %v3097_v47 }
 0x5d9   :  { %2382 = vmatpush3.bf16.msra.mxu1 %v743_v49  ;;  %2385 = vmatprep.mubr.msk.bf16.mxu1 %vm2731_vm0, %v2730_v3 }
 0x5da   :  { %2383 = vmatprep.subr.bf16.mxu1 %v2730_v3 }
 0x5dd   :  { %2384 = vmatpush3.bf16.msra.mxu1 %v742_v55  ;;  %v882_v55 = vld [vmem:[%s3419_s8] sm:$0xff] }
 0x5de   :  { %2397 = vmatprep.subr.bf16.mxu1 %v2730_v3  ;;  %v887_v58 = vpack.c.bf16 %v883_v56, %v882_v55 }
 0x5e0   :  { %2386 = vmatmul.mubr.msk.bf16.vlgmr.msra.gmra.mxu1 %vm261_vm2, %v3006_v18 }
 0x5e1   :  { %2399 = vmatprep.mubr.msk.bf16.mxu1 %vm2731_vm0, %v2730_v3 }
 0x690   :  { %v641_v63 = vpop.f32.mrf.mxu1 }
 0x691   :  { %v642_v0 = vadd.f32 %v2191_v62, %v641_v63 }
 0x692   :  { %v2359_v1 = vpop.f32.mrf.mxu1 }
 0x693   :  { %2091 = vst.msk [vmem:[#allocation2] sm:$0xff] %vm202_vm1, %v642_v0 }
 0x694   :  { %v644_v18 = vpop.f32.mrf.mxu1 }
 0x695   :  { %v985_v18 = vld [vmem:[%s3420_s14 + $0x10] sm:$0xff] }
 0x696   :  { %v2360_v2 = vpop.f32.mrf.mxu1 }
 0x697   :  { %v986_v2 = vld [vmem:[%s3420_s14 + $0x18] sm:$0xff] }
 0x698   :  { %v731_v4 = vpop.f32.mrf.mxu1 }
 0x699   :  { %v3120_v6 = vmax.f32 %v731_v4, 0.0  ;;  %v989_v4 = vpack.c.bf16 %v986_v2, %v985_v18  ;;  %v1122_v18 = vld [vmem:[%s3423_s30 + $0x10] sm:$0xff]  ;;  %v1123_v2 = vld [vmem:[%s3423_s30 + $0x18] sm:$0xff] }
 0x69a   :  { %v2371_v7 = vpop.f32.mrf.mxu1 }
 0x69b   :  { %v3124_v8 = vpack.c.bf16 %v3120_v6, %v3120_v6 }
 0x69c   :  { %v734_v9 = vpop.f32.mrf.mxu1 }
 0x69d   :  { %2378 = vmatmul.mubr.msk.bf16.vlgmr.msra.gmra.mxu0 %vm261_vm2, %v3124_v8 }
 0x69e   :  { %v2372_v10 = vpop.f32.mrf.mxu1  ;;  %2393 = vmatprep.mubr.msk.bf16.mxu0 %vm2731_vm0, %v2730_v3  ;;  %2390 = vmatpush3.bf16.msra.mxu0 %v888_v44 }
 0x69f   :  { %2391 = vmatprep.subr.bf16.mxu0 %v2730_v3  ;;  %v980_v10 = vld [vmem:[%s3421_s19 + $0x18] sm:$0xff] }
 0x6a0   :  { %v828_v11 = vpop.f32.mrf.mxu1 }
 0x6a2   :  { %v2387_v12 = vpop.f32.mrf.mxu1  ;;  %2392 = vmatpush3.bf16.msra.mxu0 %v887_v58 }
 0x6a3   :  { %2403 = vmatprep.subr.bf16.mxu0 %v2730_v3 }
 0x6a4   :  { %v831_v13 = vpop.f32.mrf.mxu1 }
 0x6a6   :  { %v2388_v14 = vpop.f32.mrf.mxu1 }
 0x6a7   :  { %v977_v14 = vld [vmem:[%s3421_s19] sm:$0xff] }
 0x75d   :  { %v788_v15 = vpop.f32.mrf.mxu0 }
 0x75e   :  { %v829_v19 = vadd.f32 %v828_v11, %v788_v15  ;;  %v978_v15 = vld [vmem:[%s3421_s19 + $0x8] sm:$0xff] }
 0x75f   :  { %v2379_v20 = vpop.f32.mrf.mxu0 }
 0x760   :  { %v841_v21 = vadd.f32 %v2197_v17, %v829_v19  ;;  %v981_v19 = vpack.c.bf16 %v978_v15, %v977_v14  ;;  %v983_v20 = vld [vmem:[%s3420_s14] sm:$0xff] }
 0x761   :  { %v791_v22 = vpop.f32.mrf.mxu0 }
 0x762   :  { %v842_v23 = vmul.f32 0.01, %v841_v21 }
 0x763   :  { %v2380_v24 = vpop.f32.mrf.mxu0 }
 0x764   :  { %v843_v25 = vmax.f32 %v841_v21, %v842_v23  ;;  %v984_v21 = vld [vmem:[%s3420_s14 + $0x8] sm:$0xff] }
 0x765   :  { %v988_v22 = vpack.c.bf16 %v984_v21, %v983_v20  ;;  %v1216_v21 = vld [vmem:[%s3424_s6 + $0x8] sm:$0xff] }
 0x766   :  { %v845_v26 = vsel %vm844_vm5, %v843_v25, -inf }
 0x767   :  { %846 = vmax.xlane.f32.xlu0 %v845_v26 }
 0x7f0   :  { %v847_v27 = vpop.xlane.xlu0 %846 }
 0x7f1   :  { %v848_v28 = vsub.f32 %v843_v25, %v847_v27 }
 0x7f3   :  { %v849_v29 = vmul.f32 1.442695, %v848_v28 }
 0x7f5   :  { %2600 = vpow2.f32 %v849_v29 }
 0x802   :  { %v2601_v5 = vpop.eup %2600 }
 0x803   :  { %v851_v31 = vsel %vm844_vm5, %v2601_v5, 0.0 }
 0x804   :  { %852 = vadd.xlane.f32.xlu0 %v851_v31 }
 0x88d   :  { %v853_v33 = vpop.xlane.xlu0 %852 }
 0x88e   :  { %2602 = vrcp.f32 %v853_v33 }
 0x89b   :  { %v2603_v34 = vpop.eup %2602 }
 0x89c   :  { %v855_v35 = vmul.f32 %v2603_v34, %v2601_v5  ;;  %v2202_v34 = vld [vmem:[%s3422_s24] ss:$0 sm:$0xff] }
 0x89e   :  { %v856_v36 = vmul.f32 %v855_v35, %v855_v35 }
 0x8a0   :  { %v857_v37 = vsel %vm844_vm5, %v856_v36, 0.0 }
 0x8a1   :  { %858 = vadd.xlane.f32.xlu1 %v857_v37 }
 0x92a   :  { %v859_v45 = vpop.xlane.xlu1 %858 }
 0x92b   :  { %2604 = vrsqrt.f32 %v859_v45  ;;  %vm862_vm6 = vcmp.eq.f32.partialorder %v859_v45, inf  ;;  %v865_v49 = vand.u32 2147483648, %v859_v45  ;;  %vm864_vm7 = vcmp.eq.f32.partialorder %v859_v45, 0.0 }
 0x938   :  { %v2605_v46 = vpop.eup %2604 }
 0x939   :  { %v861_v48 = vmul.f32 %v2605_v46, %v859_v45 }
 0x93b   :  { %v863_v51 = vsel %vm862_vm6, %v859_v45, %v861_v48 }
 0x93c   :  { %v866_v53 = vsel %vm864_vm7, %v865_v49, %v863_v51 }
 0x93d   :  { %v867_v54 = vmax.f32 %v866_v53, 1e-12 }
 0x93f   :  { %2606 = vrcp.f32 %v867_v54 }
 0x94c   :  { %v2607_v57 = vpop.eup %2606 }
 0x94d   :  { %v869_v59 = vmul.f32 %v2607_v57, %v855_v35 }
 0x94f   :  { %877 = vperm.xlu0 %2593, %v869_v59   ;;  %872 = vperm.xlu1 %2592, %v869_v59  }
 0x953   :  { %2595 = vset.pattern.permute.xlu0 %v2733_v39 }
 0x9ca   :  { %v878_v60 = vpop.permute.xlu0 %877  ;;  %v873_v61 = vpop.permute.xlu1 %872 }
 0x9cb   :  { %v880_v62 = vmul.f32 %v878_v60, %v3002_v16  ;;  %v875_v63 = vmul.f32 %v873_v61, %v3120_v6  ;;  %v979_v16 = vld [vmem:[%s3421_s19 + $0x10] sm:$0xff] }
 0x9cc   :  { %v982_v13 = vpack.c.bf16 %v980_v10, %v979_v16  ;;  %v1120_v16 = vld [vmem:[%s3423_s30] sm:$0xff]  ;;  %v1121_v10 = vld [vmem:[%s3423_s30 + $0x8] sm:$0xff] }
 0x9cd   :  { %v881_v0 = vadd.f32 %v880_v62, %v875_v63 }
 0x9cf   :  { %v886_v1 = vpack.c.bf16 %v881_v0, %v881_v0 }
 0x9d1   :  { %2394 = vmatmul.mubr.msk.bf16.vlgmr.msra.gmra.mxu0 %vm261_vm2, %v886_v1 }
 0x9d2   :  { %2407 = vmatprep.mubr.msk.bf16.mxu0 %vm2731_vm0, %v2730_v3  ;;  %2404 = vmatpush3.bf16.msra.mxu0 %v989_v4 }
 0x9d3   :  { %2405 = vmatprep.subr.bf16.mxu0 %v2730_v3 }
 0x9d6   :  { %2406 = vmatpush3.bf16.msra.mxu0 %v988_v22 }
 0x9d7   :  { %2419 = vmatprep.subr.bf16.mxu0 %v2730_v3 }
 0xa91   :  { %v926_v7 = vpop.f32.mrf.mxu0 }
 0xa92   :  { %v932_v9 = vpack.c.bf16 %v926_v7, %v926_v7  ;;  %v1126_v7 = vpack.c.bf16 %v1123_v2, %v1122_v18 }
 0xa93   :  { %v2395_v6 = vpop.f32.mrf.mxu0 }
 0xa94   :  { %v934_v11 = vsel %vm432_vm3, %v932_v9, 0  ;;  %v1125_v6 = vpack.c.bf16 %v1121_v10, %v1120_v16  ;;  %v1352_v10 = vld [vmem:[%s3427_s16] sm:$0xff] }
 0xa95   :  { %v929_v12 = vpop.f32.mrf.mxu0  ;;  %2398 = vmatpush3.bf16.msra.mxu1 %v934_v11 }
 0xa96   :  { %2411 = vmatprep.subr.bf16.mxu1 %v2730_v3 }
 0xa97   :  { %v2396_v17 = vpop.f32.mrf.mxu0 }
 0xa98   :  { %2400 = vmatmul.mubr.msk.bf16.vlgmr.msra.gmra.mxu1 %vm428_vm4, %v3097_v47 }
 0xa99   :  { %2412 = vmatpush3.bf16.msra.mxu1 %v982_v13  ;;  %2415 = vmatprep.mubr.msk.bf16.mxu1 %vm2731_vm0, %v2730_v3 }
 0xa9a   :  { %2413 = vmatprep.subr.bf16.mxu1 %v2730_v3 }
 0xa9d   :  { %2414 = vmatpush3.bf16.msra.mxu1 %v981_v19 }
 0xa9e   :  { %2427 = vmatprep.subr.bf16.mxu1 %v2730_v3 }
 0xaa0   :  { %2416 = vmatmul.mubr.msk.bf16.vlgmr.msra.gmra.mxu1 %vm261_vm2, %v3023_v32 }
 0xaa1   :  { %2429 = vmatprep.mubr.msk.bf16.mxu1 %vm2731_vm0, %v2730_v3 }
 0xb58   :  { %v970_v23 = vpop.f32.mrf.mxu1 }
 0xb59   :  { %v3168_v24 = vmax.f32 %v970_v23, 0.0 }
 0xb5a   :  { %v2401_v25 = vpop.f32.mrf.mxu1 }
 0xb5b   :  { %v3172_v26 = vpack.c.bf16 %v3168_v24, %v3168_v24 }
 0xb5c   :  { %v973_v27 = vpop.f32.mrf.mxu1 }
 0xb5d   :  { %2408 = vmatmul.mubr.msk.bf16.vlgmr.msra.gmra.mxu0 %vm261_vm2, %v3172_v26  ;;  %v1218_v27 = vld [vmem:[%s3425_s12] sm:$0xff] }
 0xb5e   :  { %v2402_v32 = vpop.f32.mrf.mxu1  ;;  %2423 = vmatprep.mubr.msk.bf16.mxu0 %vm2731_vm0, %v2730_v3  ;;  %2420 = vmatpush3.bf16.msra.mxu0 %v1126_v7 }
 0xb5f   :  { %2421 = vmatprep.subr.bf16.mxu0 %v2730_v3  ;;  %v1219_v32 = vld [vmem:[%s3425_s12 + $0x8] sm:$0xff] }
 0xb60   :  { %v1067_v28 = vpop.f32.mrf.mxu1 }
 0xb62   :  { %v2417_v29 = vpop.f32.mrf.mxu1  ;;  %2422 = vmatpush3.bf16.msra.mxu0 %v1125_v6  ;;  %v1353_v6 = vld [vmem:[%s3427_s16 + $0x8] sm:$0xff] }
 0xb63   :  { %2433 = vmatprep.subr.bf16.mxu0 %v2730_v3 }
 0xb64   :  { %v1070_v5 = vpop.f32.mrf.mxu1 }
 0xb66   :  { %v2418_v31 = vpop.f32.mrf.mxu1 }
 0xc1d   :  { %v1027_v33 = vpop.f32.mrf.mxu0 }
 0xc1e   :  { %v1068_v35 = vadd.f32 %v1067_v28, %v1027_v33  ;;  %v1221_v28 = vpack.c.bf16 %v1219_v32, %v1218_v27  ;;  %v1536_v27 = vld [vmem:[%s3429_s22] sm:$0xff] }
 0xc1f   :  { %v2409_v36 = vpop.f32.mrf.mxu0 }
 0xc20   :  { %v1080_v37 = vadd.f32 %v2202_v34, %v1068_v35 }
 0xc21   :  { %v1030_v39 = vpop.f32.mrf.mxu0 }
 0xc22   :  { %v1081_v40 = vmul.f32 0.01, %v1080_v37 }
 0xc23   :  { %v2410_v42 = vpop.f32.mrf.mxu0 }
 0xc24   :  { %v1082_v44 = vmax.f32 %v1080_v37, %v1081_v40  ;;  %v2207_v42 = vld [vmem:[%s3426_s15] ss:$0 sm:$0xff] }
 0xc26   :  { %v1083_v45 = vsel %vm844_vm5, %v1082_v44, -inf }
 0xc27   :  { %1084 = vmax.xlane.f32.xlu1 %v1083_v45 }
 0xcb0   :  { %v1085_v46 = vpop.xlane.xlu1 %1084 }
 0xcb1   :  { %v1086_v48 = vsub.f32 %v1082_v44, %v1085_v46 }
 0xcb3   :  { %v1087_v49 = vmul.f32 1.442695, %v1086_v48 }
 0xcb5   :  { %2608 = vpow2.f32 %v1087_v49 }
 0xcc2   :  { %v2609_v51 = vpop.eup %2608 }
 0xcc3   :  { %v1089_v53 = vsel %vm844_vm5, %v2609_v51, 0.0 }
 0xcc4   :  { %1090 = vadd.xlane.f32.xlu0 %v1089_v53 }
 0xd4d   :  { %v1091_v54 = vpop.xlane.xlu0 %1090 }
 0xd4e   :  { %2610 = vrcp.f32 %v1091_v54 }
 0xd5b   :  { %v2611_v55 = vpop.eup %2610 }
 0xd5c   :  { %v1093_v56 = vmul.f32 %v2611_v55, %v2609_v51 }
 0xd5e   :  { %v1094_v57 = vmul.f32 %v1093_v56, %v1093_v56 }
 0xd60   :  { %v1095_v58 = vsel %vm844_vm5, %v1094_v57, 0.0 }
 0xd61   :  { %1096 = vadd.xlane.f32.xlu1 %v1095_v58 }
 0xdea   :  { %v1097_v59 = vpop.xlane.xlu1 %1096 }
 0xdeb   :  { %2612 = vrsqrt.f32 %v1097_v59  ;;  %vm1100_vm8 = vcmp.eq.f32.partialorder %v1097_v59, inf  ;;  %v1103_v62 = vand.u32 2147483648, %v1097_v59  ;;  %vm1102_vm9 = vcmp.eq.f32.partialorder %v1097_v59, 0.0 }
 0xdf8   :  { %v2613_v60 = vpop.eup %2612 }
 0xdf9   :  { %v1099_v61 = vmul.f32 %v2613_v60, %v1097_v59 }
 0xdfb   :  { %v1101_v63 = vsel %vm1100_vm8, %v1097_v59, %v1099_v61 }
 0xdfc   :  { %v1104_v0 = vsel %vm1102_vm9, %v1103_v62, %v1101_v63 }
 0xdfd   :  { %v1105_v1 = vmax.f32 %v1104_v0, 1e-12 }
 0xdff   :  { %2614 = vrcp.f32 %v1105_v1 }
 0xe0c   :  { %v2615_v4 = vpop.eup %2614 }
 0xe0d   :  { %v1107_v9 = vmul.f32 %v2615_v4, %v1093_v56 }
 0xe0f   :  { %1110 = vperm.xlu1 %2592, %v1107_v9  }
 0xe13   :  { %2594 = vset.pattern.permute.xlu1 %v2732_v38  ;;  %v1215_v38 = vld [vmem:[%s3424_s6] sm:$0xff] }
 0xe14   :  { %1115 = vperm.xlu1 %2594, %v1107_v9  }
 0xe8a   :  { %v1111_v11 = vpop.permute.xlu1 %1110 }
 0xe8b   :  { %v1113_v13 = vmul.f32 %v1111_v11, %v3168_v24  ;;  %v1217_v24 = vpack.c.bf16 %v1216_v21, %v1215_v38  ;;  %v1453_v38 = vld [vmem:[%s3428_s18 + $0x18] sm:$0xff] }
 0xe8f   :  { %v1116_v12 = vpop.permute.xlu1 %1115 }
 0xe90   :  { %v1118_v14 = vmul.f32 %v1116_v12, %v3019_v30  ;;  %v1355_v12 = vpack.c.bf16 %v1353_v6, %v1352_v10  ;;  %v1865_v10 = vld [vmem:[%s3434_s2] sm:$0xff] }
 0xe92   :  { %v1119_v15 = vadd.f32 %v1118_v14, %v1113_v13 }
 0xe94   :  { %v1124_v17 = vpack.c.bf16 %v1119_v15, %v1119_v15 }
 0xe96   :  { %2424 = vmatmul.mubr.msk.bf16.vlgmr.msra.gmra.mxu0 %vm261_vm2, %v1124_v17 }
 0xe97   :  { %2435 = vmatprep.mubr.msk.bf16.mxu0 %vm2731_vm0, %v2730_v3  ;;  %2434 = vmatpush3.bf16.msra.mxu0 %v1221_v28  ;;  %v1630_v28 = vld [vmem:[%s3430_s23] sm:$0xff] }
 0xe98   :  { %2445 = vmatprep.subr.bf16.mxu0 %v2730_v3 }
 0xf56   :  { %v1164_v19 = vpop.f32.mrf.mxu0 }
 0xf57   :  { %v1170_v20 = vpack.c.bf16 %v1164_v19, %v1164_v19 }
 0xf58   :  { %v2425_v22 = vpop.f32.mrf.mxu0 }
 0xf59   :  { %v1172_v23 = vsel %vm432_vm3, %v1170_v20, 0  ;;  %v1452_v20 = vld [vmem:[%s3428_s18 + $0x10] sm:$0xff] }
 0xf5a   :  { %v1167_v25 = vpop.f32.mrf.mxu0  ;;  %2428 = vmatpush3.bf16.msra.mxu1 %v1172_v23  ;;  %v1455_v22 = vpack.c.bf16 %v1453_v38, %v1452_v20 }
 0xf5b   :  { %2439 = vmatprep.subr.bf16.mxu1 %v2730_v3  ;;  %v1450_v25 = vld [vmem:[%s3428_s18] sm:$0xff] }
 0xf5c   :  { %v2426_v30 = vpop.f32.mrf.mxu0 }
 0xf5d   :  { %2430 = vmatmul.mubr.msk.bf16.vlgmr.msra.gmra.mxu1 %vm428_vm4, %v3097_v47 }
 0xf5e   :  { %2440 = vmatpush3.bf16.msra.mxu1 %v1217_v24  ;;  %2441 = vmatprep.mubr.msk.bf16.mxu1 %vm2731_vm0, %v2730_v3  ;;  %v1451_v24 = vld [vmem:[%s3428_s18 + $0x8] sm:$0xff] }
 0xf5f   :  { %2451 = vmatprep.subr.bf16.mxu1 %v2730_v3  ;;  %v1454_v30 = vpack.c.bf16 %v1451_v24, %v1450_v25 }
 0xf65   :  { %2442 = vmatmul.mubr.msk.bf16.vlgmr.msra.gmra.mxu1 %vm202_vm1, %v3037_v43 }
 0xf66   :  { %2453 = vmatprep.mubr.msk.bf16.mxu1 %vm2731_vm0, %v2730_v3 }
0x101d   :  { %v1208_v29 = vpop.f32.mrf.mxu1 }
0x101e   :  { %v1214_v5 = vmax.f32 %v1208_v29, 0.0  ;;  %v1631_v29 = vpack.c.bf16 %v1630_v28, %v1630_v28 }
0x101f   :  { %v2431_v31 = vpop.f32.mrf.mxu1 }
0x1020   :  { %v3210_v33 = vpack.c.bf16 %v1214_v5, %v1214_v5  ;;  %v1766_v31 = vld [vmem:[%s3431_s26 + $0x10] sm:$0xff] }
0x1021   :  { %v1211_v34 = vpop.f32.mrf.mxu1 }
0x1022   :  { %2436 = vmatmul.mubr.msk.bf16.vlgmr.msra.gmra.mxu0 %vm202_vm1, %v3210_v33  ;;  %v1767_v34 = vld [vmem:[%s3431_s26 + $0x18] sm:$0xff] }
0x1023   :  { %v2432_v43 = vpop.f32.mrf.mxu1  ;;  %2447 = vmatprep.mubr.msk.bf16.mxu0 %vm2731_vm0, %v2730_v3  ;;  %2446 = vmatpush3.bf16.msra.mxu0 %v1355_v12 }
0x1024   :  { %2457 = vmatprep.subr.bf16.mxu0 %v2730_v3  ;;  %v1769_v43 = vpack.c.bf16 %v1767_v34, %v1766_v31  ;;  %v1916_v31 = vld [vmem:[%s3437_s11] sm:$0xff] }
0x1025   :  { %v1299_v35 = vpop.f32.mrf.mxu1 }
0x1027   :  { %v2443_v36 = vpop.f32.mrf.mxu1 }
0x1028   :  { %v1765_v36 = vld [vmem:[%s3431_s26 + $0x8] sm:$0xff] }
0x1029   :  { %v1302_v37 = vpop.f32.mrf.mxu1 }
0x102b   :  { %v2444_v39 = vpop.f32.mrf.mxu1 }
0x10e2   :  { %v1259_v40 = vpop.f32.mrf.mxu0 }
0x10e3   :  { %v1300_v44 = vadd.f32 %v1299_v35, %v1259_v40  ;;  %v1764_v35 = vld [vmem:[%s3431_s26] sm:$0xff] }
0x10e4   :  { %v2437_v45 = vpop.f32.mrf.mxu0  ;;  %v1768_v37 = vpack.c.bf16 %v1765_v36, %v1764_v35  ;;  %v3313_v36 = vld [vmem:[%s3438_s0] sm:$0xff] }
0x10e5   :  { %v1312_v46 = vadd.f32 %v2207_v42, %v1300_v44  ;;  %v1446_v42 = vld [vmem:[%s3432_s28 + $0x10] sm:$0xff]  ;;  %v1447_v44 = vld [vmem:[%s3432_s28 + $0x18] sm:$0xff] }
0x10e6   :  { %v1262_v48 = vpop.f32.mrf.mxu0 }
0x10e7   :  { %v1313_v49 = vmul.f32 0.01, %v1312_v46 }
0x10e8   :  { %v2438_v51 = vpop.f32.mrf.mxu0 }
0x10e9   :  { %v1314_v53 = vmax.f32 %v1312_v46, %v1313_v49  ;;  %v1449_v49 = vpack.c.bf16 %v1447_v44, %v1446_v42  ;;  %v1444_v51 = vld [vmem:[%s3432_s28] sm:$0xff] }
0x10eb   :  { %v1315_v54 = vsel %vm844_vm5, %v1314_v53, -inf }
0x10ec   :  { %1316 = vmax.xlane.f32.xlu1 %v1315_v54 }
0x1175   :  { %v1317_v55 = vpop.xlane.xlu1 %1316 }
0x1176   :  { %v1318_v56 = vsub.f32 %v1314_v53, %v1317_v55  ;;  %v1445_v53 = vld [vmem:[%s3432_s28 + $0x8] sm:$0xff] }
0x1177   :  { %v1448_v55 = vpack.c.bf16 %v1445_v53, %v1444_v51 }
0x1178   :  { %v1319_v57 = vmul.f32 1.442695, %v1318_v56 }
0x117a   :  { %2616 = vpow2.f32 %v1319_v57 }
0x1187   :  { %v2617_v58 = vpop.eup %2616 }
0x1188   :  { %v1321_v59 = vsel %vm844_vm5, %v2617_v58, 0.0 }
0x1189   :  { %1322 = vadd.xlane.f32.xlu0 %v1321_v59 }
0x1212   :  { %v1323_v60 = vpop.xlane.xlu0 %1322 }
0x1213   :  { %2618 = vrcp.f32 %v1323_v60 }
0x1220   :  { %v2619_v61 = vpop.eup %2618 }
0x1221   :  { %v1325_v62 = vmul.f32 %v2619_v61, %v2617_v58 }
0x1223   :  { %v1326_v63 = vmul.f32 %v1325_v62, %v1325_v62 }
0x1225   :  { %v1327_v0 = vsel %vm844_vm5, %v1326_v63, 0.0 }
0x1226   :  { %1328 = vadd.xlane.f32.xlu0 %v1327_v0 }
0x12af   :  { %v1329_v1 = vpop.xlane.xlu0 %1328 }
0x12b0   :  { %2620 = vrsqrt.f32 %v1329_v1  ;;  %vm1332_vm10 = vcmp.eq.f32.partialorder %v1329_v1, inf  ;;  %v1335_v4 = vand.u32 2147483648, %v1329_v1  ;;  %vm1334_vm11 = vcmp.eq.f32.partialorder %v1329_v1, 0.0 }
0x12bd   :  { %v2621_v18 = vpop.eup %2620 }
0x12be   :  { %v1331_v2 = vmul.f32 %v2621_v18, %v1329_v1 }
0x12c0   :  { %v1333_v7 = vsel %vm1332_vm10, %v1329_v1, %v1331_v2 }
0x12c1   :  { %v1336_v9 = vsel %vm1334_vm11, %v1335_v4, %v1333_v7 }
0x12c2   :  { %v1337_v16 = vmax.f32 %v1336_v9, 1e-12 }
0x12c4   :  { %2622 = vrcp.f32 %v1337_v16  ;;  %v1580_v16 = vld [vmem:[%s3433_s1] sm:$0xff] }
0x12c5   :  { %v1582_v6 = vpack.c.bf16 %v1580_v16, %v1580_v16 }
0x12c7   :  { %v1587_v12 = vsel %vm432_vm3, %v1582_v6, 0 }
0x12d1   :  { %v2623_v11 = vpop.eup %2622 }
0x12d2   :  { %v1339_v13 = vmul.f32 %v2623_v11, %v1325_v62  ;;  %v1866_v11 = vpack.c.bf16 %v1865_v10, %v1865_v10 }
0x12d4   :  { %1347 = vperm.xlu1 %2594, %v1339_v13   ;;  %1342 = vperm.xlu0 %2595, %v1339_v13   ;;  %v1868_v13 = vsel %vm432_vm3, %v1866_v11, 0 }
0x134f   :  { %v1348_v14 = vpop.permute.xlu1 %1347  ;;  %v1343_v15 = vpop.permute.xlu0 %1342 }
0x1350   :  { %v1350_v17 = vmul.f32 %v1348_v14, %v3033_v41  ;;  %v1345_v19 = vmul.f32 %v1343_v15, %v1214_v5  ;;  %v1537_v41 = vld [vmem:[%s3429_s22 + $0x8] sm:$0xff]  ;;  %v1633_v5 = vsel %vm432_vm3, %v1631_v29, 0  ;;  %v1714_v14 = vld [vmem:[%s3435_s7 + $0x10] sm:$0xff]  ;;  %v1715_v15 = vld [vmem:[%s3435_s7 + $0x18] sm:$0xff] }
0x1351   :  { %v1538_v32 = vpack.c.bf16 %v1537_v41, %v1536_v27  ;;  %v1717_v38 = vpack.c.bf16 %v1715_v15, %v1714_v14  ;;  %v1816_v27 = vld [vmem:[%s3436_s10] sm:$0xff]  ;;  %v1817_v41 = vld [vmem:[%s3436_s10 + $0x8] sm:$0xff] }
0x1352   :  { %v1351_v21 = vadd.f32 %v1350_v17, %v1345_v19  ;;  %v1818_v29 = vpack.c.bf16 %v1817_v41, %v1816_v27 }
0x1354   :  { %v1354_v23 = vpack.c.bf16 %v1351_v21, %v1351_v21 }
0x1356   :  { %2448 = vmatmul.mubr.msk.bf16.vlgmr.msra.gmra.mxu0 %vm202_vm1, %v1354_v23  ;;  %v1713_v23 = vld [vmem:[%s3435_s7 + $0x8] sm:$0xff] }
0x1357   :  { %2458 = vmatpush3.bf16.msra.mxu0 %v1455_v22  ;;  %2461 = vmatprep.mubr.msk.bf16.mxu0 %vm2731_vm0, %v2730_v3  ;;  %v1712_v22 = vld [vmem:[%s3435_s7] sm:$0xff] }
0x1358   :  { %2459 = vmatprep.subr.bf16.mxu0 %v2730_v3 }
0x135b   :  { %2460 = vmatpush3.bf16.msra.mxu0 %v1454_v30  ;;  %v1716_v30 = vpack.c.bf16 %v1713_v23, %v1712_v22 }
0x135c   :  { %2473 = vmatprep.subr.bf16.mxu0 %v2730_v3 }
0x135e   :  { %2462 = vmatmul.mubr.msk.bf16.vlgmr.msra.gmra.mxu0 %vm261_vm2, %v3172_v26 }
0x135f   :  { %2474 = vmatpush3.bf16.msra.mxu0 %v1538_v32  ;;  %2475 = vmatprep.mubr.msk.bf16.mxu0 %vm2731_vm0, %v2730_v3 }
0x1360   :  { %2485 = vmatprep.subr.bf16.mxu0 %v2730_v3 }
0x1366   :  { %2476 = vmatmul.mubr.msk.bf16.vlgmr.msra.gmra.mxu0 %vm202_vm1, %v3210_v33 }
0x1367   :  { %2486 = vmatpush3.bf16.msra.mxu0 %v1633_v5  ;;  %2487 = vmatprep.mubr.msk.bf16.mxu0 %vm2731_vm0, %v2730_v3 }
0x1368   :  { %2499 = vmatprep.subr.bf16.mxu0 %v2730_v3 }
0x136e   :  { %2488 = vmatmul.mubr.msk.bf16.vlgmr.msra.gmra.mxu0 %vm428_vm4, %v3051_v52 }
0x136f   :  { %2500 = vmatpush3.bf16.msra.mxu0 %v1769_v43  ;;  %2503 = vmatprep.mubr.msk.bf16.mxu0 %vm2731_vm0, %v2730_v3  ;;  %v1917_v43 = vpack.c.bf16 %v1916_v31, %v1916_v31  ;;  %v2736_v31 = vmov 4  }
0x1370   :  { %2501 = vmatprep.subr.bf16.mxu0 %v2730_v3 }
0x1371   :  { %v1919_v35 = vsel %vm432_vm3, %v1917_v43, 0 }
0x1373   :  { %2502 = vmatpush3.bf16.msra.mxu0 %v1768_v37 }
0x1374   :  { %2513 = vmatprep.subr.bf16.mxu0 %v2730_v3 }
0x1376   :  { %2504 = vmatmul.mubr.msk.bf16.vlgmr.msra.gmra.mxu0 %vm261_vm2, %v3172_v26 }
0x1377   :  { %2515 = vmatprep.mubr.msk.bf16.mxu0 %vm2731_vm0, %v2730_v3  ;;  %2514 = vmatpush3.bf16.msra.mxu0 %v1868_v13 }
0x1378   :  { %2525 = vmatprep.subr.bf16.mxu0 %v2730_v3 }
0x1416   :  { %v1393_v39 = vpop.f32.mrf.mxu0 }
0x1417   :  { %v1399_v40 = vpack.c.bf16 %v1393_v39, %v1393_v39 }
0x1418   :  { %v2449_v45 = vpop.f32.mrf.mxu0 }
0x1419   :  { %v1401_v46 = vsel %vm432_vm3, %v1399_v40, 0 }
0x141a   :  { %v1396_v48 = vpop.f32.mrf.mxu0  ;;  %2452 = vmatpush3.bf16.msra.mxu1 %v1401_v46 }
0x141b   :  { %2465 = vmatprep.subr.bf16.mxu1 %v2730_v3  ;;  %v2215_v48 = vld [vmem:[%s3439_s5] ss:$0 sm:$0xff] }
0x141c   :  { %v2450_v54 = vpop.f32.mrf.mxu0 }
0x141d   :  { %2454 = vmatmul.mubr.msk.bf16.vlgmr.msra.gmra.mxu1 %vm428_vm4, %v3097_v47 }
0x141e   :  { %v3269_v26 = vpop.f32.mrf.mxu0  ;;  %2466 = vmatpush3.bf16.msra.mxu1 %v1449_v49  ;;  %2469 = vmatprep.mubr.msk.bf16.mxu1 %vm2731_vm0, %v2730_v3 }
0x141f   :  { %2467 = vmatprep.subr.bf16.mxu1 %v2730_v3 }
0x1420   :  { %v2463_v56 = vpop.f32.mrf.mxu0 }
0x1422   :  { %v1493_v57 = vpop.f32.mrf.mxu0  ;;  %2468 = vmatpush3.bf16.msra.mxu1 %v1448_v55 }
0x1423   :  { %2479 = vmatprep.subr.bf16.mxu1 %v2730_v3 }
0x1424   :  { %v2464_v58 = vpop.f32.mrf.mxu0 }
0x1425   :  { %2470 = vmatmul.mubr.msk.bf16.vlgmr.msra.gmra.mxu1 %vm261_vm2, %v3124_v8 }
0x1426   :  { %v3277_v59 = vpop.f32.mrf.mxu0  ;;  %2481 = vmatprep.mubr.msk.bf16.mxu1 %vm2731_vm0, %v2730_v3  ;;  %2480 = vmatpush3.bf16.msra.mxu1 %v1587_v12 }
0x1427   :  { %2491 = vmatprep.subr.bf16.mxu1 %v2730_v3 }
0x1428   :  { %v2477_v60 = vpop.f32.mrf.mxu0 }
0x142a   :  { %v1576_v61 = vpop.f32.mrf.mxu0 }
0x142c   :  { %v2478_v62 = vpop.f32.mrf.mxu0 }
0x142e   :  { %v3281_v63 = vpop.f32.mrf.mxu0 }
0x1430   :  { %v2489_v0 = vpop.f32.mrf.mxu0 }
0x1432   :  { %v1672_v1 = vpop.f32.mrf.mxu0 }
0x1434   :  { %v2490_v18 = vpop.f32.mrf.mxu0 }
0x1436   :  { %v3283_v2 = vpop.f32.mrf.mxu0 }
0x1438   :  { %v2505_v4 = vpop.f32.mrf.mxu0 }
0x143a   :  { %v1807_v7 = vpop.f32.mrf.mxu0 }
0x143c   :  { %v2506_v9 = vpop.f32.mrf.mxu0 }
0x14dd   :  { %v1437_v17 = vpop.f32.mrf.mxu1 }
0x14de   :  { %v1443_v19 = vmax.f32 %v1437_v17, 0.0 }
0x14df   :  { %v2455_v20 = vpop.f32.mrf.mxu1 }
0x14e0   :  { %v1581_v21 = vpack.c.bf16 %v1443_v19, %v1443_v19 }
0x14e1   :  { %v1440_v25 = vpop.f32.mrf.mxu1 }
0x14e2   :  { %2482 = vmatmul.mubr.msk.bf16.vlgmr.msra.gmra.mxu1 %vm428_vm4, %v1581_v21  ;;  %2516 = vmatmul.mubr.msk.bf16.vlgmr.msra.gmra.mxu0 %vm428_vm4, %v1581_v21 }
0x14e3   :  { %v2456_v24 = vpop.f32.mrf.mxu1  ;;  %2492 = vmatpush3.bf16.msra.mxu1 %v1717_v38  ;;  %2495 = vmatprep.mubr.msk.bf16.mxu1 %vm2731_vm0, %v2730_v3 }
0x14e4   :  { %2493 = vmatprep.subr.bf16.mxu1 %v2730_v3  ;;  %2527 = vmatprep.mubr.msk.bf16.mxu0 %vm2731_vm0, %v2730_v3 }
0x14e5   :  { %v1530_v32 = vpop.f32.mrf.mxu1 }
0x14e7   :  { %v2471_v28 = vpop.f32.mrf.mxu1  ;;  %2494 = vmatpush3.bf16.msra.mxu1 %v1716_v30 }
0x14e8   :  { %2507 = vmatprep.subr.bf16.mxu1 %v2730_v3 }
0x14e9   :  { %v1533_v5 = vpop.f32.mrf.mxu1 }
0x14ea   :  { %2496 = vmatmul.mubr.msk.bf16.vlgmr.msra.gmra.mxu1 %vm261_vm2, %v3124_v8  ;;  %v2037_v8 = vpack.c.bf16 %v3313_v36, %v3313_v36  ;;  %v2735_v5 = vmov 3  }
0x14eb   :  { %v2472_v34 = vpop.f32.mrf.mxu1  ;;  %2508 = vmatpush3.bf16.msra.mxu1 %v1818_v29  ;;  %2509 = vmatprep.mubr.msk.bf16.mxu1 %vm2731_vm0, %v2730_v3  ;;  %v2734_v29 = vmov 2  }
0x14ec   :  { %2519 = vmatprep.subr.bf16.mxu1 %v2730_v3  ;;  %v2039_v37 = vsel %vm432_vm3, %v2037_v8, 0  ;;  %v2024_v34 = vmul.f32 %v3047_v50, %v3047_v50 }
0x14ee   :  { %v2025_v43 = vsel %vm428_vm4, %v2024_v34, 0.0 }
0x14f2   :  { %2510 = vmatmul.mubr.msk.bf16.vlgmr.msra.gmra.mxu1 %vm202_vm1, %v3210_v33  ;;  %v1531_v33 = vadd.f32 %v1530_v32, %v3269_v26 }
0x14f3   :  { %2520 = vmatpush3.bf16.msra.mxu1 %v1919_v35  ;;  %2521 = vmatprep.mubr.msk.bf16.mxu1 %vm2731_vm0, %v2730_v3 }
0x14f4   :  { %2531 = vmatprep.subr.bf16.mxu1 %v2730_v3  ;;  %v1579_v39 = vadd.f32 %v3277_v59, %v1531_v33 }
0x14fa   :  { %2522 = vmatmul.mubr.msk.bf16.vlgmr.msra.gmra.mxu1 %vm428_vm4, %v3051_v52 }
0x14fb   :  { %2532 = vmatpush3.bf16.msra.mxu1 %v2039_v37  ;;  %2533 = vmatprep.mubr.msk.bf16.mxu1 %vm2731_vm0, %v2730_v3 }
0x1502   :  { %2534 = vmatmul.mubr.msk.bf16.vlgmr.msra.gmra.mxu1 %vm428_vm4, %v3051_v52 }
0x15a2   :  { %v1623_v40 = vpop.f32.mrf.mxu1  ;;  %v3331_v42 = vpop.f32.mrf.mxu0 }
0x15a3   :  { %v1629_v44 = vadd.f32 %v1623_v40, %v1579_v39 }
0x15a4   :  { %v2483_v45 = vpop.f32.mrf.mxu1  ;;  %v2517_v46 = vpop.f32.mrf.mxu0 }
0x15a5   :  { %v1675_v49 = vadd.f32 %v3281_v63, %v1629_v44 }
0x15a6   :  { %v1626_v51 = vpop.f32.mrf.mxu1  ;;  %v1907_v53 = vpop.f32.mrf.mxu0 }
0x15a7   :  { %v1683_v54 = vadd.f32 %v2215_v48, %v1675_v49 }
0x15a8   :  { %v2484_v3 = vpop.f32.mrf.mxu1  ;;  %v2518_v55 = vpop.f32.mrf.mxu0 }
0x15a9   :  { %v1684_v56 = vmul.f32 0.01, %v1683_v54 }
0x15aa   :  { %v3335_v52 = vpop.f32.mrf.mxu1 }
0x15ab   :  { %v1685_v26 = vmax.f32 %v1683_v54, %v1684_v56 }
0x15ac   :  { %v2497_v57 = vpop.f32.mrf.mxu1 }
0x15ad   :  { %v1687_v58 = vsel %vm1686_vm12, %v1685_v26, -inf }
0x15ae   :  { %v1755_v59 = vpop.f32.mrf.mxu1  ;;  %1688 = vmax.xlane.f32.xlu0 %v1687_v58 }
0x15b0   :  { %v2498_v60 = vpop.f32.mrf.mxu1 }
0x15b2   :  { %v1853_v61 = vpop.f32.mrf.mxu1 }
0x15b4   :  { %v2511_v62 = vpop.f32.mrf.mxu1 }
0x15b6   :  { %v1856_v0 = vpop.f32.mrf.mxu1 }
0x15b8   :  { %v2512_v63 = vpop.f32.mrf.mxu1 }
0x15ba   :  { %v1955_v1 = vpop.f32.mrf.mxu1 }
0x15bc   :  { %v2523_v18 = vpop.f32.mrf.mxu1 }
0x15be   :  { %v1958_v4 = vpop.f32.mrf.mxu1 }
0x15c0   :  { %v2524_v7 = vpop.f32.mrf.mxu1 }
0x15c2   :  { %v3338_v9 = vpop.f32.mrf.mxu1 }
0x15c3   :  { %v2081_v60 = vmul.f32 2.0, %v3338_v9 }
0x15c4   :  { %v2535_v16 = vpop.f32.mrf.mxu1 }
0x15c6   :  { %v2078_v10 = vpop.f32.mrf.mxu1 }
0x15c8   :  { %v2536_v6 = vpop.f32.mrf.mxu1 }
0x1637   :  { %v1689_v11 = vpop.xlane.xlu0 %1688 }
0x1638   :  { %v1690_v12 = vsub.f32 %v1685_v26, %v1689_v11 }
0x163a   :  { %v1691_v13 = vmul.f32 1.442695, %v1690_v12 }
0x163c   :  { %2624 = vpow2.f32 %v1691_v13 }
0x1649   :  { %v2625_v14 = vpop.eup %2624 }
0x164a   :  { %v1693_v15 = vsel %vm1686_vm12, %v2625_v14, 0.0 }
0x164b   :  { %1694 = vadd.xlane.f32.xlu1 %v1693_v15 }
0x16d4   :  { %v1695_v17 = vpop.xlane.xlu1 %1694 }
0x16d5   :  { %2626 = vrcp.f32 %v1695_v17 }
0x16e2   :  { %v2627_v19 = vpop.eup %2626 }
0x16e3   :  { %v1697_v20 = vmul.f32 %v2627_v19, %v2625_v14 }
0x16e5   :  { %v1698_v38 = vmul.f32 %v1697_v20, %v1697_v20 }
0x16e7   :  { %v1699_v21 = vsel %vm1686_vm12, %v1698_v38, 0.0 }
0x16e8   :  { %1700 = vadd.xlane.f32.xlu0 %v1699_v21 }
0x1771   :  { %v1701_v22 = vpop.xlane.xlu0 %1700 }
0x1772   :  { %2628 = vrsqrt.f32 %v1701_v22  ;;  %vm1704_vm13 = vcmp.eq.f32.partialorder %v1701_v22, inf  ;;  %v1707_v24 = vand.u32 2147483648, %v1701_v22  ;;  %vm1706_vm14 = vcmp.eq.f32.partialorder %v1701_v22, 0.0 }
0x177f   :  { %v2629_v23 = vpop.eup %2628 }
0x1780   :  { %v1703_v25 = vmul.f32 %v2629_v23, %v1701_v22 }
0x1782   :  { %v1705_v30 = vsel %vm1704_vm13, %v1701_v22, %v1703_v25 }
0x1783   :  { %v1708_v27 = vsel %vm1706_vm14, %v1707_v24, %v1705_v30 }
0x1784   :  { %v1709_v41 = vmax.f32 %v1708_v27, 1e-12 }
0x1786   :  { %2630 = vrcp.f32 %v1709_v41 }
0x1793   :  { %v2631_v32 = vpop.eup %2630 }
0x1794   :  { %v1711_v28 = vmul.f32 %v2631_v32, %v1697_v20 }
0x1796   :  { %1811 = vperm.xlu1 %2594, %v1711_v28   ;;  %1760 = vperm.xlu0 %2595, %v1711_v28  }
0x179a   :  { %2596 = vset.pattern.permute.xlu1 %v2734_v29  ;;  %2597 = vset.pattern.permute.xlu0 %v2735_v5 }
0x179b   :  { %1860 = vperm.xlu1 %2596, %v1711_v28   ;;  %1911 = vperm.xlu0 %2597, %v1711_v28  }
0x179f   :  { %2598 = vset.pattern.permute.xlu1 %v2736_v31  ;;  %2599 = vset.pattern.permute.xlu0 %v2736_v31 }
0x17a0   :  { %1962 = vperm.xlu1 %2598, %v1711_v28  }
0x17c4   :  { %2026 = vadd.xlane.f32.xlu1 %v2025_v43 }
0x1811   :  { %v1812_v35 = vpop.permute.xlu1 %1811  ;;  %v1761_v8 = vpop.permute.xlu0 %1760 }
0x1812   :  { %v1814_v37 = vmul.f32 %v1812_v35, %v3283_v2  ;;  %v1763_v33 = vmul.f32 %v1761_v8, %v3335_v52  ;;  %v2028_v2 = vmul.f32 %v3313_v36, %v3313_v36 }
0x1814   :  { %v1815_v44 = vadd.f32 %v1814_v37, %v1763_v33  ;;  %v2029_v55 = vsel %vm2011_vm15, %v2028_v2, 0.0 }
0x1815   :  { %v2030_v56 = vrot.slane %v2029_v55, 4 }
0x1816   :  { %v1861_v39 = vpop.permute.xlu1 %1860  ;;  %v1912_v40 = vpop.permute.xlu0 %1911 }
0x1817   :  { %v1863_v45 = vmul.f32 %v1861_v39, %v1853_v61  ;;  %v1914_v48 = vmul.f32 %v1912_v40, %v3331_v42  ;;  %v2031_v52 = vadd.f32 %v2030_v56, %v2029_v55 }
0x1819   :  { %v1864_v46 = vadd.f32 %v1863_v45, %v1815_v44  ;;  %v2032_v42 = vrot.slane %v2031_v52, 2 }
0x181b   :  { %v1915_v49 = vadd.f32 %v1914_v48, %v1864_v46  ;;  %v1963_v51 = vpop.permute.xlu1 %1962  ;;  %v2033_v26 = vadd.f32 %v2032_v42, %v2031_v52 }
0x181c   :  { %v1965_v53 = vmul.f32 %v1963_v51, %v1955_v1 }
0x181d   :  { %v2034_v57 = vrot.slane %v2033_v26, 1 }
0x181e   :  { %v1966_v50 = vadd.f32 %v1965_v53, %v1915_v49 }
0x181f   :  { %v2035_v58 = vadd.f32 %v2034_v57, %v2033_v26 }
0x1820   :  { %v1967_v54 = vpack.c.bf16 %v1966_v50, %v1966_v50 }
0x1822   :  { %v1969_v3 = vsel %vm432_vm3, %v1967_v54, 0 }
0x1823   :  { %2526 = vmatpush3.bf16.msra.mxu0 %v1969_v3 }
0x1826   :  { %2528 = vmatmul.mubr.msk.bf16.vlgmr.msra.gmra.mxu0 %vm428_vm4, %v3097_v47 }
0x184d   :  { %v2027_v59 = vpop.xlane.xlu1 %2026 }
0x184e   :  { %v2036_v61 = vadd.f32 %v2035_v58, %v2027_v59 }
0x1850   :  { %v2082_v62 = vsub.f32 %v2036_v61, %v2081_v60 }
0x1852   :  { %v2083_v0 = vmax.f32 %v2082_v62, 0.0 }
0x1854   :  { %v2084_v47 = vadd.f32 1.0, %v2083_v0 }
0x1856   :  { %2632 = vrcp.f32 %v2084_v47 }
0x1863   :  { %v2633_v63 = vpop.eup %2632 }
0x1864   :  { %v2086_v36 = vsel %vm2011_vm15, %v2633_v63, 0.0 }
0x1865   :  { %2087 = vadd.xlane.f32.xlu1 %v2086_v36 }
0x18e6   :  { %v2005_v1 = vpop.f32.mrf.mxu0 }
0x18e7   :  { %v2012_v18 = vsel %vm2011_vm15, %v2005_v1, -inf }
0x18e8   :  { %2013 = vmax.xlane.f32.xlu0 %v2012_v18  ;;  %v2529_v4 = vpop.f32.mrf.mxu0 }
0x18ea   :  { %v2008_v7 = vpop.f32.mrf.mxu0 }
0x18ec   :  { %v2530_v16 = vpop.f32.mrf.mxu0 }
0x18ee   :  { %v2088_v10 = vpop.xlane.xlu1 %2087 }
0x18ef   :  { %2634 = vrcp.f32 %v2088_v10 }
0x18fc   :  { %v2635_v9 = vpop.eup %2634 }
0x18fd   :  { %v2090_v6 = vmul.f32 %v2635_v9, %v2633_v63 }
0x18ff   :  { %2092 = vst.msk [vmem:[%s2967_s27] sm:$0xff] %vm2011_vm15, %v2090_v6 }
0x1971   :  { %v2014_v11 = vpop.xlane.xlu0 %2013 }
0x1972   :  { %v2015_v12 = vsub.f32 %v2005_v1, %v2014_v11 }
0x1974   :  { %v2016_v13 = vmul.f32 1.442695, %v2015_v12 }
0x1976   :  { %2636 = vpow2.f32 %v2016_v13 }
0x1983   :  { %v2637_v14 = vpop.eup %2636 }
0x1984   :  { %v2018_v15 = vsel %vm2011_vm15, %v2637_v14, 0.0 }
0x1985   :  { %2019 = vadd.xlane.f32.xlu0 %v2018_v15 }
0x1986   :  { %2651 = shalt.err (!%p2648_p4)
}
0x1987   :  { %2104 = dma.vmem_to_hbm [thread:$0]  %s2102_s17, 128, %s2962_s20, [#allocation3]  }
0x1988   :  { %s2660_s27 = scalar_lea.vmem %s2116_s25, 128  ;;  %p2665_p6 = scmp.lt.s32.totalorder %s2116_s25, %s2116_s25 }
0x1989   :  { %p2661_p5 = scmp.ne.s32.totalorder %s2116_s25, %s2660_s27  ;;  %p2666_p7 = scmp.lt.s32.totalorder %s2660_s27, %s2660_s27 }
0x198b   :  { %p2667_p8 = por %p2666_p7, %p2665_p6 }
0x198d   :  { %p2668_p9 = pnand %p2667_p8, %p2661_p5 }
0x198f   :  { %2671 = shalt.err (!%p2668_p9)
}
0x1990   :  { %2118 = dma.vmem_to_hbm [thread:$0]  %s2116_s25, 128, %s2977_s9, [#allocation5]  }
0x1a0e   :  { %v2020_v17 = vpop.xlane.xlu0 %2019 }
0x1a0f   :  { %2638 = vrcp.f32 %v2020_v17 }
0x1a1c   :  { %v2639_v19 = vpop.eup %2638 }
0x1a1d   :  { %v2022_v20 = vmul.f32 %v2639_v19, %v2637_v14 }
0x1a1f   :  { %2093 = vst.msk [vmem:[%s2972_s4] sm:$0xff] %vm2011_vm15, %v2022_v20 }
0x1a20   :  { %2680 = dma.done.wait [#allocation3], 128  }
0x1a21   :  { %2681 = vsyncadd [#allocation3], 4294967168 }
0x1a22   :  { %2682 = dma.done.wait [#allocation5], 128  }
0x1a23   :  { %2683 = vsyncadd [#allocation5], 4294967168 }
0x1a24   :  { %2129 = vsyncpa [#allocation3], 1 }
0x1a25   :  { %2130 = vsyncpa [#allocation5], 1 }

</bundles_post_ra>
